<compile_context>
chip_gen: v7x
topology: tpu7x:2x2x1
jax: 0.10.0
libtpu: 0.0.40
codegen_flags: <defaults>
</compile_context>

<pallas_src>
import functools

import jax
import jax.numpy as jnp
from jax import lax
from jax.experimental import pallas as pl
from jax.experimental.pallas import tpu as pltpu

# ----------------------------- config (small) -----------------------------
SEQ = 8                      # num_tokens
HIDDEN = 64                  # config.hidden_size
NUM_HEADS = 4                # config.num_attention_heads
NUM_KV_HEADS = 2             # config.num_key_value_heads
HEAD_DIM = HIDDEN // NUM_HEADS
Q_SIZE = NUM_HEADS * HEAD_DIM
KV_SIZE = NUM_KV_HEADS * HEAD_DIM
KV_GROUP = NUM_HEADS // NUM_KV_HEADS
NUM_EXPERTS = 4              # config.num_experts
TOP_K = 2                    # config.num_experts_per_tok
MOE_INTER = 32               # config.moe_intermediate_size
SHARED_INTER = 32            # config.shared_expert_intermediate_size
RMS_EPS = 1e-6               # config.rms_norm_eps
ROPE_THETA = 10000.0
SCALE = HEAD_DIM ** -0.5
# Released Qwen1.5/2-MoE configs ship config.norm_topk_prob = False
# (FusedMoE renormalize flag). Flip to True if the target config sets it.
NORM_TOPK_PROB = False

_VMEM = functools.partial(pl.BlockSpec, memory_space=pltpu.MemorySpace.VMEM)


# ------------------------------ in-kernel helpers ---------------------------
def _rms(x, w):
    var = jnp.mean(x * x, axis=-1, keepdims=True)
    return x * lax.rsqrt(var + RMS_EPS) * w


def _silu(x):
    return x * jax.nn.sigmoid(x)


# ------------------------------ fused layer kernel --------------------------
def _layer_kernel(x_ref, res_ref, cos_ref, sin_ref,
                  in_w_ref, post_w_ref,
                  wqkv_ref, bqkv_ref, wo_ref,
                  wgate_ref, wsgate_ref,
                  wsh_gu_ref, wsh_down_ref,
                  wexp_gu_ref, wexp_down_ref,
                  out_ref, *, has_residual):
    f32 = jnp.float32
    x = x_ref[...]

    # ----- input layernorm (+ optional residual add) -----
    if has_residual:
        resid1 = x + res_ref[...]
    else:
        resid1 = x
    h = _rms(resid1, in_w_ref[...])

    # ----- self attention: QKV + bias -----
    qkv = jnp.dot(h, wqkv_ref[...], preferred_element_type=f32) + bqkv_ref[...]

    cos = cos_ref[...]           # [T, HEAD_DIM//2]
    sin = sin_ref[...]
    half = HEAD_DIM // 2

    def rope(xh):                # NeoX-style rotate-half, rotary_dim == head_dim
        x1 = xh[:, :half]
        x2 = xh[:, half:]
        return jnp.concatenate([x1 * cos - x2 * sin, x2 * cos + x1 * sin], axis=-1)

    # rope'd K and raw V per KV head (computed once, shared by grouped Q heads)
    k_heads = []
    v_heads = []
    for j in range(NUM_KV_HEADS):
        k0 = Q_SIZE + j * HEAD_DIM
        v0 = Q_SIZE + KV_SIZE + j * HEAD_DIM
        k_heads.append(rope(qkv[:, k0:k0 + HEAD_DIM]))
        v_heads.append(qkv[:, v0:v0 + HEAD_DIM])

    t = x.shape[0]
    row = lax.broadcasted_iota(jnp.int32, (t, t), 0)
    col = lax.broadcasted_iota(jnp.int32, (t, t), 1)
    causal = col <= row          # hoisted once, reused by every head

    attn_heads = []
    for hh in range(NUM_HEADS):
        qh = rope(qkv[:, hh * HEAD_DIM:(hh + 1) * HEAD_DIM])
        j = hh // KV_GROUP
        # contract last dims directly -- no explicit k.T materialization
        s = lax.dot_general(qh, k_heads[j], (((1,), (1,)), ((), ())),
                            preferred_element_type=f32) * SCALE
        s = jnp.where(causal, s, -1e30)
        m = jnp.max(s, axis=-1, keepdims=True)
        p = jnp.exp(s - m)
        p = p * pl.reciprocal(jnp.sum(p, axis=-1, keepdims=True), approx=True)
        attn_heads.append(jnp.dot(p, v_heads[j], preferred_element_type=f32))
    attn = jnp.concatenate(attn_heads, axis=-1)                 # [T, Q_SIZE]
    attn_o = jnp.dot(attn, wo_ref[...], preferred_element_type=f32)

    # ----- post-attention layernorm -----
    resid2 = attn_o + resid1
    h2 = _rms(resid2, post_w_ref[...])

    # ----- shared expert (SiLU-and-mul MLP) with fused sigmoid gate -----
    gu = jnp.dot(h2, wsh_gu_ref[...], preferred_element_type=f32)
    act = _silu(gu[:, :SHARED_INTER]) * gu[:, SHARED_INTER:]
    shared = jnp.dot(act, wsh_down_ref[...], preferred_element_type=f32)
    sgate = jax.nn.sigmoid(
        jnp.sum(h2 * wsgate_ref[...], axis=-1, keepdims=True))  # [T, 1], VPU sum
    shared = sgate * shared

    # ----- router: softmax + top-2 (ties broken by lowest index, like top_k) -----
    logits = jnp.dot(h2, wgate_ref[...], preferred_element_type=f32)   # [T, E]
    lmax = jnp.max(logits, axis=-1, keepdims=True)
    el = jnp.exp(logits - lmax)
    probs = el / jnp.sum(el, axis=-1, keepdims=True)

    eidx = lax.broadcasted_iota(jnp.int32, probs.shape, 1)
    max1 = jnp.max(probs, axis=-1, keepdims=True)
    top1 = jnp.min(jnp.where(probs == max1, eidx, NUM_EXPERTS),
                   axis=-1, keepdims=True)
    sel1 = eidx == top1
    probs_m = jnp.where(sel1, -1e30, probs)
    max2 = jnp.max(probs_m, axis=-1, keepdims=True)
    top2 = jnp.min(jnp.where(probs_m == max2, eidx, NUM_EXPERTS),
                   axis=-1, keepdims=True)
    sel2 = eidx == top2
    route_w = jnp.where(sel1 | sel2, probs, 0.0)                 # [T, E]
    if NORM_TOPK_PROB:
        route_w = route_w * pl.reciprocal(
            jnp.sum(route_w, axis=-1, keepdims=True), approx=True)

    # ----- routed experts: one fused gate_up matmul + one fused down matmul -----
    gu_all = jnp.dot(h2, wexp_gu_ref[...], preferred_element_type=f32)  # [T, E*2I]
    acts = []
    for e in range(NUM_EXPERTS):
        base = e * 2 * MOE_INTER
        g = gu_all[:, base:base + MOE_INTER]
        u = gu_all[:, base + MOE_INTER:base + 2 * MOE_INTER]
        acts.append(_silu(g) * u * route_w[:, e:e + 1])
    act_all = jnp.concatenate(acts, axis=-1)                     # [T, E*I] = [8, 128]
    moe_out = jnp.dot(act_all, wexp_down_ref[...], preferred_element_type=f32)

    out = moe_out + shared
    # single lane-dense [T, 2H] = [8, 128] store: (layer_out || residual_out)
    out_ref[...] = jnp.concatenate([out, resid2], axis=-1)


# --------------------------- decoder layer wrapper ---------------------------
def decoder_layer(positions, hidden_states, params, residual=None):
    t, h = hidden_states.shape
    has_residual = residual is not None
    res_in = residual if has_residual else hidden_states   # unused when False

    # RoPE cos/sin table (position-only glue, computed outside the kernel).
    inv_freq = 1.0 / (ROPE_THETA ** (
        jnp.arange(0, HEAD_DIM, 2, dtype=jnp.float32) / HEAD_DIM))
    freqs = positions.astype(jnp.float32)[:, None] * inv_freq[None, :]  # [T, hd/2]
    cos = jnp.cos(freqs)
    sin = jnp.sin(freqs)

    # Flatten expert weights so the routed path is two lane-dense matmuls.
    w_exp_gu_flat = jnp.transpose(params["w_exp_gu"], (1, 0, 2)).reshape(
        HIDDEN, NUM_EXPERTS * 2 * MOE_INTER)                       # [H, E*2I]
    w_exp_down_flat = params["w_exp_down"].reshape(
        NUM_EXPERTS * MOE_INTER, HIDDEN)                           # [E*I, H]
    w_shared_gate_t = params["w_shared_gate"].reshape(1, HIDDEN)   # [1, H]

    kernel = functools.partial(_layer_kernel, has_residual=has_residual)
    out_cat = pl.pallas_call(
        kernel,
        out_shape=jax.ShapeDtypeStruct((t, 2 * h), jnp.float32),
        in_specs=[_VMEM()] * 15,
        out_specs=_VMEM(),
    )(hidden_states, res_in, cos, sin,
      params["input_ln_w"], params["post_ln_w"],
      params["w_qkv"], params["b_qkv"], params["w_o"],
      params["w_gate"], w_shared_gate_t,
      params["w_shared_gu"], params["w_shared_down"],
      w_exp_gu_flat, w_exp_down_flat)

    return out_cat[:, :h], out_cat[:, h:]


# ------------------------------ parameter init ------------------------------
def init_params(key):
    ks = jax.random.split(key, 10)
    s = 0.02
    return {
        "input_ln_w": jnp.ones((1, HIDDEN), jnp.float32),
        "post_ln_w": jnp.ones((1, HIDDEN), jnp.float32),
        "w_qkv": jax.random.normal(ks[0], (HIDDEN, Q_SIZE + 2 * KV_SIZE), jnp.float32) * s,
        "b_qkv": jax.random.normal(ks[1], (1, Q_SIZE + 2 * KV_SIZE), jnp.float32) * s,
        "w_o": jax.random.normal(ks[2], (Q_SIZE, HIDDEN), jnp.float32) * s,
        "w_gate": jax.random.normal(ks[3], (HIDDEN, NUM_EXPERTS), jnp.float32) * s,
        "w_exp_gu": jax.random.normal(ks[4], (NUM_EXPERTS, HIDDEN, 2 * MOE_INTER), jnp.float32) * s,
        "w_exp_down": jax.random.normal(ks[5], (NUM_EXPERTS, MOE_INTER, HIDDEN), jnp.float32) * s,
        "w_shared_gu": jax.random.normal(ks[6], (HIDDEN, 2 * SHARED_INTER), jnp.float32) * s,
        "w_shared_down": jax.random.normal(ks[7], (SHARED_INTER, HIDDEN), jnp.float32) * s,
        "w_shared_gate": jax.random.normal(ks[8], (HIDDEN, 1), jnp.float32) * s,
    }


# ----------------------------------- main ------------------------------------
if __name__ == "__main__":
    key = jax.random.PRNGKey(0)
    k_in, k_par = jax.random.split(key)
    hidden_states = jax.random.normal(k_in, (SEQ, HIDDEN), jnp.float32)
    positions = jnp.arange(SEQ, dtype=jnp.int32)
    params = init_params(k_par)

    fwd = jax.jit(functools.partial(decoder_layer, residual=None))
    out, residual = fwd(positions, hidden_states, params)
    jax.block_until_ready((out, residual))

    assert out.shape == (SEQ, HIDDEN) and residual.shape == (SEQ, HIDDEN)
    assert jnp.isfinite(out).all() and jnp.isfinite(residual).all()
    print("KERNEL_OK")
</pallas_src>

<mosaic_0001>
module attributes {stable_mosaic.version = 11 : i64} {
  func.func @_layer_kernel(%arg0: memref<8x64xf32, #tpu.memory_space<vmem>>, %arg1: memref<8x64xf32, #tpu.memory_space<vmem>>, %arg2: memref<8x8xf32, #tpu.memory_space<vmem>>, %arg3: memref<8x8xf32, #tpu.memory_space<vmem>>, %arg4: memref<1x64xf32, #tpu.memory_space<vmem>>, %arg5: memref<1x64xf32, #tpu.memory_space<vmem>>, %arg6: memref<64x128xf32, #tpu.memory_space<vmem>>, %arg7: memref<1x128xf32, #tpu.memory_space<vmem>>, %arg8: memref<64x64xf32, #tpu.memory_space<vmem>>, %arg9: memref<64x4xf32, #tpu.memory_space<vmem>>, %arg10: memref<1x64xf32, #tpu.memory_space<vmem>>, %arg11: memref<64x64xf32, #tpu.memory_space<vmem>>, %arg12: memref<32x64xf32, #tpu.memory_space<vmem>>, %arg13: memref<64x256xf32, #tpu.memory_space<vmem>>, %arg14: memref<128x64xf32, #tpu.memory_space<vmem>>, %arg15: memref<8x128xf32, #tpu.memory_space<vmem>>) attributes {dimension_semantics = [], scalar_prefetch = 0 : i64, scratch_operands = 0 : i64, tpu.core_type = #tpu.core_type<tc>} {
    %c0 = arith.constant 0 : index
    %c0_0 = arith.constant 0 : index
    %0 = vector.load %arg0[%c0, %c0_0] : memref<8x64xf32, #tpu.memory_space<vmem>>, vector<8x64xf32>
    %c0_1 = arith.constant 0 : index
    %c0_2 = arith.constant 0 : index
    %1 = vector.load %arg4[%c0_1, %c0_2] : memref<1x64xf32, #tpu.memory_space<vmem>>, vector<1x64xf32>
    %2 = arith.mulf %0, %0 : vector<8x64xf32>
    %cst = arith.constant dense<0.000000e+00> : vector<8xf32>
    %3 = vector.multi_reduction <add>, %2, %cst [1] : vector<8x64xf32> to vector<8xf32>
    %4 = vector.shape_cast %3 : vector<8xf32> to vector<8x1xf32>
    %cst_3 = arith.constant 6.400000e+01 : f32
    %5 = vector.broadcast %cst_3 : f32 to vector<8x1xf32>
    %6 = arith.divf %4, %5 : vector<8x1xf32>
    %cst_4 = arith.constant 9.99999997E-7 : f32
    %7 = vector.broadcast %cst_4 : f32 to vector<8x1xf32>
    %8 = arith.addf %6, %7 : vector<8x1xf32>
    %9 = math.rsqrt %8 : vector<8x1xf32>
    %10 = vector.broadcast %9 : vector<8x1xf32> to vector<8x64xf32>
    %11 = arith.mulf %0, %10 : vector<8x64xf32>
    %12 = vector.broadcast %1 : vector<1x64xf32> to vector<8x64xf32>
    %13 = arith.mulf %11, %12 : vector<8x64xf32>
    %c0_5 = arith.constant 0 : index
    %c0_6 = arith.constant 0 : index
    %14 = vector.load %arg6[%c0_5, %c0_6] : memref<64x128xf32, #tpu.memory_space<vmem>>, vector<64x128xf32>
    %cst_7 = arith.constant dense<0.000000e+00> : vector<8x128xf32>
    %15 = tpu.matmul %13, %14, %cst_7 {dimension_numbers = #tpu.dot_dimension_numbers<[1], [0], [0], [1], [0, 0, 1, 1], [], []>} : vector<8x64xf32>, vector<64x128xf32>, vector<8x128xf32> -> vector<8x128xf32>
    %c0_8 = arith.constant 0 : index
    %c0_9 = arith.constant 0 : index
    %16 = vector.load %arg7[%c0_8, %c0_9] : memref<1x128xf32, #tpu.memory_space<vmem>>, vector<1x128xf32>
    %17 = vector.broadcast %16 : vector<1x128xf32> to vector<8x128xf32>
    %18 = arith.addf %15, %17 : vector<8x128xf32>
    %c0_10 = arith.constant 0 : index
    %c0_11 = arith.constant 0 : index
    %19 = vector.load %arg2[%c0_10, %c0_11] : memref<8x8xf32, #tpu.memory_space<vmem>>, vector<8x8xf32>
    %c0_12 = arith.constant 0 : index
    %c0_13 = arith.constant 0 : index
    %20 = vector.load %arg3[%c0_12, %c0_13] : memref<8x8xf32, #tpu.memory_space<vmem>>, vector<8x8xf32>
    %21 = vector.extract_strided_slice %18 {offsets = [0, 64], sizes = [8, 16], strides = [1, 1]} : vector<8x128xf32> to vector<8x16xf32>
    %22 = vector.extract_strided_slice %21 {offsets = [0, 0], sizes = [8, 8], strides = [1, 1]} : vector<8x16xf32> to vector<8x8xf32>
    %23 = vector.extract_strided_slice %21 {offsets = [0, 8], sizes = [8, 8], strides = [1, 1]} : vector<8x16xf32> to vector<8x8xf32>
    %24 = arith.mulf %22, %19 : vector<8x8xf32>
    %25 = arith.mulf %23, %20 : vector<8x8xf32>
    %26 = arith.subf %24, %25 : vector<8x8xf32>
    %27 = arith.mulf %23, %19 : vector<8x8xf32>
    %28 = arith.mulf %22, %20 : vector<8x8xf32>
    %29 = arith.addf %27, %28 : vector<8x8xf32>
    %30 = tpu.concatenate %26, %29 in 1 : vector<8x8xf32>, vector<8x8xf32> -> vector<8x16xf32>
    %31 = vector.extract_strided_slice %18 {offsets = [0, 96], sizes = [8, 16], strides = [1, 1]} : vector<8x128xf32> to vector<8x16xf32>
    %32 = vector.extract_strided_slice %18 {offsets = [0, 80], sizes = [8, 16], strides = [1, 1]} : vector<8x128xf32> to vector<8x16xf32>
    %33 = vector.extract_strided_slice %32 {offsets = [0, 0], sizes = [8, 8], strides = [1, 1]} : vector<8x16xf32> to vector<8x8xf32>
    %34 = vector.extract_strided_slice %32 {offsets = [0, 8], sizes = [8, 8], strides = [1, 1]} : vector<8x16xf32> to vector<8x8xf32>
    %35 = arith.mulf %33, %19 : vector<8x8xf32>
    %36 = arith.mulf %34, %20 : vector<8x8xf32>
    %37 = arith.subf %35, %36 : vector<8x8xf32>
    %38 = arith.mulf %34, %19 : vector<8x8xf32>
    %39 = arith.mulf %33, %20 : vector<8x8xf32>
    %40 = arith.addf %38, %39 : vector<8x8xf32>
    %41 = tpu.concatenate %37, %40 in 1 : vector<8x8xf32>, vector<8x8xf32> -> vector<8x16xf32>
    %42 = vector.extract_strided_slice %18 {offsets = [0, 112], sizes = [8, 16], strides = [1, 1]} : vector<8x128xf32> to vector<8x16xf32>
    %43 = tpu.iota {dimensions = array<i32: 0>} : vector<8x8xi32>
    %44 = tpu.iota {dimensions = array<i32: 1>} : vector<8x8xi32>
    %45 = arith.cmpi sle, %44, %43 : vector<8x8xi32>
    %46 = vector.extract_strided_slice %18 {offsets = [0, 0], sizes = [8, 16], strides = [1, 1]} : vector<8x128xf32> to vector<8x16xf32>
    %47 = vector.extract_strided_slice %46 {offsets = [0, 0], sizes = [8, 8], strides = [1, 1]} : vector<8x16xf32> to vector<8x8xf32>
    %48 = vector.extract_strided_slice %46 {offsets = [0, 8], sizes = [8, 8], strides = [1, 1]} : vector<8x16xf32> to vector<8x8xf32>
    %49 = arith.mulf %47, %19 : vector<8x8xf32>
    %50 = arith.mulf %48, %20 : vector<8x8xf32>
    %51 = arith.subf %49, %50 : vector<8x8xf32>
    %52 = arith.mulf %48, %19 : vector<8x8xf32>
    %53 = arith.mulf %47, %20 : vector<8x8xf32>
    %54 = arith.addf %52, %53 : vector<8x8xf32>
    %55 = tpu.concatenate %51, %54 in 1 : vector<8x8xf32>, vector<8x8xf32> -> vector<8x16xf32>
    %cst_14 = arith.constant dense<0.000000e+00> : vector<8x8xf32>
    %56 = tpu.matmul %55, %30, %cst_14 {dimension_numbers = #tpu.dot_dimension_numbers<[1], [1], [0], [0], [0, 0, 1, 0], [], []>} : vector<8x16xf32>, vector<8x16xf32>, vector<8x8xf32> -> vector<8x8xf32>
    %cst_15 = arith.constant 2.500000e-01 : f32
    %57 = vector.broadcast %cst_15 : f32 to vector<8x8xf32>
    %58 = arith.mulf %56, %57 : vector<8x8xf32>
    %cst_16 = arith.constant -1.000000e+30 : f32
    %59 = vector.broadcast %cst_16 : f32 to vector<8x8xf32>
    %60 = arith.select %45, %58, %59 : vector<8x8xi1>, vector<8x8xf32>
    %cst_17 = arith.constant dense<0xFF800000> : vector<8xf32>
    %61 = vector.multi_reduction <maximumf>, %60, %cst_17 [1] : vector<8x8xf32> to vector<8xf32>
    %62 = vector.shape_cast %61 : vector<8xf32> to vector<8x1xf32>
    %63 = vector.broadcast %62 : vector<8x1xf32> to vector<8x8xf32>
    %64 = arith.subf %60, %63 : vector<8x8xf32>
    %65 = math.exp %64 : vector<8x8xf32>
    %cst_18 = arith.constant dense<0.000000e+00> : vector<8xf32>
    %66 = vector.multi_reduction <add>, %65, %cst_18 [1] : vector<8x8xf32> to vector<8xf32>
    %67 = vector.shape_cast %66 : vector<8xf32> to vector<8x1xf32>
    %68 = tpu.reciprocal %67 {approx = true} : vector<8x1xf32> -> vector<8x1xf32>
    %69 = vector.broadcast %68 : vector<8x1xf32> to vector<8x8xf32>
    %70 = arith.mulf %65, %69 : vector<8x8xf32>
    %cst_19 = arith.constant dense<0.000000e+00> : vector<8x16xf32>
    %71 = tpu.matmul %70, %31, %cst_19 {dimension_numbers = #tpu.dot_dimension_numbers<[1], [0], [0], [1], [0, 0, 1, 1], [], []>} : vector<8x8xf32>, vector<8x16xf32>, vector<8x16xf32> -> vector<8x16xf32>
    %72 = vector.extract_strided_slice %18 {offsets = [0, 16], sizes = [8, 16], strides = [1, 1]} : vector<8x128xf32> to vector<8x16xf32>
    %73 = vector.extract_strided_slice %72 {offsets = [0, 0], sizes = [8, 8], strides = [1, 1]} : vector<8x16xf32> to vector<8x8xf32>
    %74 = vector.extract_strided_slice %72 {offsets = [0, 8], sizes = [8, 8], strides = [1, 1]} : vector<8x16xf32> to vector<8x8xf32>
    %75 = arith.mulf %73, %19 : vector<8x8xf32>
    %76 = arith.mulf %74, %20 : vector<8x8xf32>
    %77 = arith.subf %75, %76 : vector<8x8xf32>
    %78 = arith.mulf %74, %19 : vector<8x8xf32>
    %79 = arith.mulf %73, %20 : vector<8x8xf32>
    %80 = arith.addf %78, %79 : vector<8x8xf32>
    %81 = tpu.concatenate %77, %80 in 1 : vector<8x8xf32>, vector<8x8xf32> -> vector<8x16xf32>
    %cst_20 = arith.constant dense<0.000000e+00> : vector<8x8xf32>
    %82 = tpu.matmul %81, %30, %cst_20 {dimension_numbers = #tpu.dot_dimension_numbers<[1], [1], [0], [0], [0, 0, 1, 0], [], []>} : vector<8x16xf32>, vector<8x16xf32>, vector<8x8xf32> -> vector<8x8xf32>
    %cst_21 = arith.constant 2.500000e-01 : f32
    %83 = vector.broadcast %cst_21 : f32 to vector<8x8xf32>
    %84 = arith.mulf %82, %83 : vector<8x8xf32>
    %cst_22 = arith.constant -1.000000e+30 : f32
    %85 = vector.broadcast %cst_22 : f32 to vector<8x8xf32>
    %86 = arith.select %45, %84, %85 : vector<8x8xi1>, vector<8x8xf32>
    %cst_23 = arith.constant dense<0xFF800000> : vector<8xf32>
    %87 = vector.multi_reduction <maximumf>, %86, %cst_23 [1] : vector<8x8xf32> to vector<8xf32>
    %88 = vector.shape_cast %87 : vector<8xf32> to vector<8x1xf32>
    %89 = vector.broadcast %88 : vector<8x1xf32> to vector<8x8xf32>
    %90 = arith.subf %86, %89 : vector<8x8xf32>
    %91 = math.exp %90 : vector<8x8xf32>
    %cst_24 = arith.constant dense<0.000000e+00> : vector<8xf32>
    %92 = vector.multi_reduction <add>, %91, %cst_24 [1] : vector<8x8xf32> to vector<8xf32>
    %93 = vector.shape_cast %92 : vector<8xf32> to vector<8x1xf32>
    %94 = tpu.reciprocal %93 {approx = true} : vector<8x1xf32> -> vector<8x1xf32>
    %95 = vector.broadcast %94 : vector<8x1xf32> to vector<8x8xf32>
    %96 = arith.mulf %91, %95 : vector<8x8xf32>
    %cst_25 = arith.constant dense<0.000000e+00> : vector<8x16xf32>
    %97 = tpu.matmul %96, %31, %cst_25 {dimension_numbers = #tpu.dot_dimension_numbers<[1], [0], [0], [1], [0, 0, 1, 1], [], []>} : vector<8x8xf32>, vector<8x16xf32>, vector<8x16xf32> -> vector<8x16xf32>
    %98 = vector.extract_strided_slice %18 {offsets = [0, 32], sizes = [8, 16], strides = [1, 1]} : vector<8x128xf32> to vector<8x16xf32>
    %99 = vector.extract_strided_slice %98 {offsets = [0, 0], sizes = [8, 8], strides = [1, 1]} : vector<8x16xf32> to vector<8x8xf32>
    %100 = vector.extract_strided_slice %98 {offsets = [0, 8], sizes = [8, 8], strides = [1, 1]} : vector<8x16xf32> to vector<8x8xf32>
    %101 = arith.mulf %99, %19 : vector<8x8xf32>
    %102 = arith.mulf %100, %20 : vector<8x8xf32>
    %103 = arith.subf %101, %102 : vector<8x8xf32>
    %104 = arith.mulf %100, %19 : vector<8x8xf32>
    %105 = arith.mulf %99, %20 : vector<8x8xf32>
    %106 = arith.addf %104, %105 : vector<8x8xf32>
    %107 = tpu.concatenate %103, %106 in 1 : vector<8x8xf32>, vector<8x8xf32> -> vector<8x16xf32>
    %cst_26 = arith.constant dense<0.000000e+00> : vector<8x8xf32>
    %108 = tpu.matmul %107, %41, %cst_26 {dimension_numbers = #tpu.dot_dimension_numbers<[1], [1], [0], [0], [0, 0, 1, 0], [], []>} : vector<8x16xf32>, vector<8x16xf32>, vector<8x8xf32> -> vector<8x8xf32>
    %cst_27 = arith.constant 2.500000e-01 : f32
    %109 = vector.broadcast %cst_27 : f32 to vector<8x8xf32>
    %110 = arith.mulf %108, %109 : vector<8x8xf32>
    %cst_28 = arith.constant -1.000000e+30 : f32
    %111 = vector.broadcast %cst_28 : f32 to vector<8x8xf32>
    %112 = arith.select %45, %110, %111 : vector<8x8xi1>, vector<8x8xf32>
    %cst_29 = arith.constant dense<0xFF800000> : vector<8xf32>
    %113 = vector.multi_reduction <maximumf>, %112, %cst_29 [1] : vector<8x8xf32> to vector<8xf32>
    %114 = vector.shape_cast %113 : vector<8xf32> to vector<8x1xf32>
    %115 = vector.broadcast %114 : vector<8x1xf32> to vector<8x8xf32>
    %116 = arith.subf %112, %115 : vector<8x8xf32>
    %117 = math.exp %116 : vector<8x8xf32>
    %cst_30 = arith.constant dense<0.000000e+00> : vector<8xf32>
    %118 = vector.multi_reduction <add>, %117, %cst_30 [1] : vector<8x8xf32> to vector<8xf32>
    %119 = vector.shape_cast %118 : vector<8xf32> to vector<8x1xf32>
    %120 = tpu.reciprocal %119 {approx = true} : vector<8x1xf32> -> vector<8x1xf32>
    %121 = vector.broadcast %120 : vector<8x1xf32> to vector<8x8xf32>
    %122 = arith.mulf %117, %121 : vector<8x8xf32>
    %cst_31 = arith.constant dense<0.000000e+00> : vector<8x16xf32>
    %123 = tpu.matmul %122, %42, %cst_31 {dimension_numbers = #tpu.dot_dimension_numbers<[1], [0], [0], [1], [0, 0, 1, 1], [], []>} : vector<8x8xf32>, vector<8x16xf32>, vector<8x16xf32> -> vector<8x16xf32>
    %124 = vector.extract_strided_slice %18 {offsets = [0, 48], sizes = [8, 16], strides = [1, 1]} : vector<8x128xf32> to vector<8x16xf32>
    %125 = vector.extract_strided_slice %124 {offsets = [0, 0], sizes = [8, 8], strides = [1, 1]} : vector<8x16xf32> to vector<8x8xf32>
    %126 = vector.extract_strided_slice %124 {offsets = [0, 8], sizes = [8, 8], strides = [1, 1]} : vector<8x16xf32> to vector<8x8xf32>
    %127 = arith.mulf %125, %19 : vector<8x8xf32>
    %128 = arith.mulf %126, %20 : vector<8x8xf32>
    %129 = arith.subf %127, %128 : vector<8x8xf32>
    %130 = arith.mulf %126, %19 : vector<8x8xf32>
    %131 = arith.mulf %125, %20 : vector<8x8xf32>
    %132 = arith.addf %130, %131 : vector<8x8xf32>
    %133 = tpu.concatenate %129, %132 in 1 : vector<8x8xf32>, vector<8x8xf32> -> vector<8x16xf32>
    %cst_32 = arith.constant dense<0.000000e+00> : vector<8x8xf32>
    %134 = tpu.matmul %133, %41, %cst_32 {dimension_numbers = #tpu.dot_dimension_numbers<[1], [1], [0], [0], [0, 0, 1, 0], [], []>} : vector<8x16xf32>, vector<8x16xf32>, vector<8x8xf32> -> vector<8x8xf32>
    %cst_33 = arith.constant 2.500000e-01 : f32
    %135 = vector.broadcast %cst_33 : f32 to vector<8x8xf32>
    %136 = arith.mulf %134, %135 : vector<8x8xf32>
    %cst_34 = arith.constant -1.000000e+30 : f32
    %137 = vector.broadcast %cst_34 : f32 to vector<8x8xf32>
    %138 = arith.select %45, %136, %137 : vector<8x8xi1>, vector<8x8xf32>
    %cst_35 = arith.constant dense<0xFF800000> : vector<8xf32>
    %139 = vector.multi_reduction <maximumf>, %138, %cst_35 [1] : vector<8x8xf32> to vector<8xf32>
    %140 = vector.shape_cast %139 : vector<8xf32> to vector<8x1xf32>
    %141 = vector.broadcast %140 : vector<8x1xf32> to vector<8x8xf32>
    %142 = arith.subf %138, %141 : vector<8x8xf32>
    %143 = math.exp %142 : vector<8x8xf32>
    %cst_36 = arith.constant dense<0.000000e+00> : vector<8xf32>
    %144 = vector.multi_reduction <add>, %143, %cst_36 [1] : vector<8x8xf32> to vector<8xf32>
    %145 = vector.shape_cast %144 : vector<8xf32> to vector<8x1xf32>
    %146 = tpu.reciprocal %145 {approx = true} : vector<8x1xf32> -> vector<8x1xf32>
    %147 = vector.broadcast %146 : vector<8x1xf32> to vector<8x8xf32>
    %148 = arith.mulf %143, %147 : vector<8x8xf32>
    %cst_37 = arith.constant dense<0.000000e+00> : vector<8x16xf32>
    %149 = tpu.matmul %148, %42, %cst_37 {dimension_numbers = #tpu.dot_dimension_numbers<[1], [0], [0], [1], [0, 0, 1, 1], [], []>} : vector<8x8xf32>, vector<8x16xf32>, vector<8x16xf32> -> vector<8x16xf32>
    %150 = tpu.concatenate %71, %97, %123, %149 in 1 : vector<8x16xf32>, vector<8x16xf32>, vector<8x16xf32>, vector<8x16xf32> -> vector<8x64xf32>
    %c0_38 = arith.constant 0 : index
    %c0_39 = arith.constant 0 : index
    %151 = vector.load %arg8[%c0_38, %c0_39] : memref<64x64xf32, #tpu.memory_space<vmem>>, vector<64x64xf32>
    %cst_40 = arith.constant dense<0.000000e+00> : vector<8x64xf32>
    %152 = tpu.matmul %150, %151, %cst_40 {dimension_numbers = #tpu.dot_dimension_numbers<[1], [0], [0], [1], [0, 0, 1, 1], [], []>} : vector<8x64xf32>, vector<64x64xf32>, vector<8x64xf32> -> vector<8x64xf32>
    %153 = arith.addf %152, %0 : vector<8x64xf32>
    %c0_41 = arith.constant 0 : index
    %c0_42 = arith.constant 0 : index
    %154 = vector.load %arg5[%c0_41, %c0_42] : memref<1x64xf32, #tpu.memory_space<vmem>>, vector<1x64xf32>
    %155 = arith.mulf %153, %153 : vector<8x64xf32>
    %cst_43 = arith.constant dense<0.000000e+00> : vector<8xf32>
    %156 = vector.multi_reduction <add>, %155, %cst_43 [1] : vector<8x64xf32> to vector<8xf32>
    %157 = vector.shape_cast %156 : vector<8xf32> to vector<8x1xf32>
    %cst_44 = arith.constant 6.400000e+01 : f32
    %158 = vector.broadcast %cst_44 : f32 to vector<8x1xf32>
    %159 = arith.divf %157, %158 : vector<8x1xf32>
    %cst_45 = arith.constant 9.99999997E-7 : f32
    %160 = vector.broadcast %cst_45 : f32 to vector<8x1xf32>
    %161 = arith.addf %159, %160 : vector<8x1xf32>
    %162 = math.rsqrt %161 : vector<8x1xf32>
    %163 = vector.broadcast %162 : vector<8x1xf32> to vector<8x64xf32>
    %164 = arith.mulf %153, %163 : vector<8x64xf32>
    %165 = vector.broadcast %154 : vector<1x64xf32> to vector<8x64xf32>
    %166 = arith.mulf %164, %165 : vector<8x64xf32>
    %c0_46 = arith.constant 0 : index
    %c0_47 = arith.constant 0 : index
    %167 = vector.load %arg11[%c0_46, %c0_47] : memref<64x64xf32, #tpu.memory_space<vmem>>, vector<64x64xf32>
    %cst_48 = arith.constant dense<0.000000e+00> : vector<8x64xf32>
    %168 = tpu.matmul %166, %167, %cst_48 {dimension_numbers = #tpu.dot_dimension_numbers<[1], [0], [0], [1], [0, 0, 1, 1], [], []>} : vector<8x64xf32>, vector<64x64xf32>, vector<8x64xf32> -> vector<8x64xf32>
    %169 = vector.extract_strided_slice %168 {offsets = [0, 0], sizes = [8, 32], strides = [1, 1]} : vector<8x64xf32> to vector<8x32xf32>
    %170 = arith.negf %169 : vector<8x32xf32>
    %171 = math.exp %170 : vector<8x32xf32>
    %cst_49 = arith.constant 1.000000e+00 : f32
    %172 = vector.broadcast %cst_49 : f32 to vector<8x32xf32>
    %173 = arith.addf %172, %171 : vector<8x32xf32>
    %174 = arith.divf %172, %173 : vector<8x32xf32>
    %175 = arith.mulf %169, %174 : vector<8x32xf32>
    %176 = vector.extract_strided_slice %168 {offsets = [0, 32], sizes = [8, 32], strides = [1, 1]} : vector<8x64xf32> to vector<8x32xf32>
    %177 = arith.mulf %175, %176 : vector<8x32xf32>
    %c0_50 = arith.constant 0 : index
    %c0_51 = arith.constant 0 : index
    %178 = vector.load %arg12[%c0_50, %c0_51] : memref<32x64xf32, #tpu.memory_space<vmem>>, vector<32x64xf32>
    %cst_52 = arith.constant dense<0.000000e+00> : vector<8x64xf32>
    %179 = tpu.matmul %177, %178, %cst_52 {dimension_numbers = #tpu.dot_dimension_numbers<[1], [0], [0], [1], [0, 0, 1, 1], [], []>} : vector<8x32xf32>, vector<32x64xf32>, vector<8x64xf32> -> vector<8x64xf32>
    %c0_53 = arith.constant 0 : index
    %c0_54 = arith.constant 0 : index
    %180 = vector.load %arg10[%c0_53, %c0_54] : memref<1x64xf32, #tpu.memory_space<vmem>>, vector<1x64xf32>
    %181 = vector.broadcast %180 : vector<1x64xf32> to vector<8x64xf32>
    %182 = arith.mulf %166, %181 : vector<8x64xf32>
    %cst_55 = arith.constant dense<0.000000e+00> : vector<8xf32>
    %183 = vector.multi_reduction <add>, %182, %cst_55 [1] : vector<8x64xf32> to vector<8xf32>
    %184 = vector.shape_cast %183 : vector<8xf32> to vector<8x1xf32>
    %185 = arith.negf %184 : vector<8x1xf32>
    %186 = math.exp %185 : vector<8x1xf32>
    %cst_56 = arith.constant 1.000000e+00 : f32
    %187 = vector.broadcast %cst_56 : f32 to vector<8x1xf32>
    %188 = arith.addf %187, %186 : vector<8x1xf32>
    %189 = arith.divf %187, %188 : vector<8x1xf32>
    %190 = vector.broadcast %189 : vector<8x1xf32> to vector<8x64xf32>
    %191 = arith.mulf %190, %179 : vector<8x64xf32>
    %c0_57 = arith.constant 0 : index
    %c0_58 = arith.constant 0 : index
    %192 = vector.load %arg9[%c0_57, %c0_58] : memref<64x4xf32, #tpu.memory_space<vmem>>, vector<64x4xf32>
    %cst_59 = arith.constant dense<0.000000e+00> : vector<8x4xf32>
    %193 = tpu.matmul %166, %192, %cst_59 {dimension_numbers = #tpu.dot_dimension_numbers<[1], [0], [0], [1], [0, 0, 1, 1], [], []>} : vector<8x64xf32>, vector<64x4xf32>, vector<8x4xf32> -> vector<8x4xf32>
    %cst_60 = arith.constant dense<0xFF800000> : vector<8xf32>
    %194 = vector.multi_reduction <maximumf>, %193, %cst_60 [1] : vector<8x4xf32> to vector<8xf32>
    %195 = vector.shape_cast %194 : vector<8xf32> to vector<8x1xf32>
    %196 = vector.broadcast %195 : vector<8x1xf32> to vector<8x4xf32>
    %197 = arith.subf %193, %196 : vector<8x4xf32>
    %198 = math.exp %197 : vector<8x4xf32>
    %cst_61 = arith.constant dense<0.000000e+00> : vector<8xf32>
    %199 = vector.multi_reduction <add>, %198, %cst_61 [1] : vector<8x4xf32> to vector<8xf32>
    %200 = vector.shape_cast %199 : vector<8xf32> to vector<8x1xf32>
    %201 = vector.broadcast %200 : vector<8x1xf32> to vector<8x4xf32>
    %202 = arith.divf %198, %201 : vector<8x4xf32>
    %203 = tpu.iota {dimensions = array<i32: 1>} : vector<8x4xi32>
    %cst_62 = arith.constant dense<0xFF800000> : vector<8xf32>
    %204 = vector.multi_reduction <maximumf>, %202, %cst_62 [1] : vector<8x4xf32> to vector<8xf32>
    %205 = vector.shape_cast %204 : vector<8xf32> to vector<8x1xf32>
    %206 = vector.broadcast %205 : vector<8x1xf32> to vector<8x4xf32>
    %207 = arith.cmpf oeq, %202, %206 : vector<8x4xf32>
    %c4_i32 = arith.constant 4 : i32
    %208 = vector.broadcast %c4_i32 : i32 to vector<8x4xi32>
    %209 = arith.select %207, %203, %208 : vector<8x4xi1>, vector<8x4xi32>
    %cst_63 = arith.constant dense<2147483647> : vector<8xi32>
    %210 = vector.multi_reduction <minsi>, %209, %cst_63 [1] : vector<8x4xi32> to vector<8xi32>
    %211 = vector.shape_cast %210 : vector<8xi32> to vector<8x1xi32>
    %212 = vector.broadcast %211 : vector<8x1xi32> to vector<8x4xi32>
    %213 = arith.cmpi eq, %203, %212 : vector<8x4xi32>
    %cst_64 = arith.constant -1.000000e+30 : f32
    %214 = vector.broadcast %cst_64 : f32 to vector<8x4xf32>
    %215 = arith.select %213, %214, %202 : vector<8x4xi1>, vector<8x4xf32>
    %cst_65 = arith.constant dense<0xFF800000> : vector<8xf32>
    %216 = vector.multi_reduction <maximumf>, %215, %cst_65 [1] : vector<8x4xf32> to vector<8xf32>
    %217 = vector.shape_cast %216 : vector<8xf32> to vector<8x1xf32>
    %218 = vector.broadcast %217 : vector<8x1xf32> to vector<8x4xf32>
    %219 = arith.cmpf oeq, %215, %218 : vector<8x4xf32>
    %c4_i32_66 = arith.constant 4 : i32
    %220 = vector.broadcast %c4_i32_66 : i32 to vector<8x4xi32>
    %221 = arith.select %219, %203, %220 : vector<8x4xi1>, vector<8x4xi32>
    %cst_67 = arith.constant dense<2147483647> : vector<8xi32>
    %222 = vector.multi_reduction <minsi>, %221, %cst_67 [1] : vector<8x4xi32> to vector<8xi32>
    %223 = vector.shape_cast %222 : vector<8xi32> to vector<8x1xi32>
    %224 = vector.broadcast %223 : vector<8x1xi32> to vector<8x4xi32>
    %225 = arith.cmpi eq, %203, %224 : vector<8x4xi32>
    %226 = arith.ori %213, %225 : vector<8x4xi1>
    %cst_68 = arith.constant 0.000000e+00 : f32
    %227 = vector.broadcast %cst_68 : f32 to vector<8x4xf32>
    %228 = arith.select %226, %202, %227 : vector<8x4xi1>, vector<8x4xf32>
    %c0_69 = arith.constant 0 : index
    %c0_70 = arith.constant 0 : index
    %229 = vector.load %arg13[%c0_69, %c0_70] : memref<64x256xf32, #tpu.memory_space<vmem>>, vector<64x256xf32>
    %cst_71 = arith.constant dense<0.000000e+00> : vector<8x256xf32>
    %230 = tpu.matmul %166, %229, %cst_71 {dimension_numbers = #tpu.dot_dimension_numbers<[1], [0], [0], [1], [0, 0, 1, 1], [], []>} : vector<8x64xf32>, vector<64x256xf32>, vector<8x256xf32> -> vector<8x256xf32>
    %231 = vector.extract_strided_slice %230 {offsets = [0, 0], sizes = [8, 32], strides = [1, 1]} : vector<8x256xf32> to vector<8x32xf32>
    %232 = vector.extract_strided_slice %230 {offsets = [0, 32], sizes = [8, 32], strides = [1, 1]} : vector<8x256xf32> to vector<8x32xf32>
    %233 = arith.negf %231 : vector<8x32xf32>
    %234 = math.exp %233 : vector<8x32xf32>
    %cst_72 = arith.constant 1.000000e+00 : f32
    %235 = vector.broadcast %cst_72 : f32 to vector<8x32xf32>
    %236 = arith.addf %235, %234 : vector<8x32xf32>
    %237 = arith.divf %235, %236 : vector<8x32xf32>
    %238 = arith.mulf %231, %237 : vector<8x32xf32>
    %239 = arith.mulf %238, %232 : vector<8x32xf32>
    %240 = vector.extract_strided_slice %228 {offsets = [0, 0], sizes = [8, 1], strides = [1, 1]} : vector<8x4xf32> to vector<8x1xf32>
    %241 = vector.broadcast %240 : vector<8x1xf32> to vector<8x32xf32>
    %242 = arith.mulf %239, %241 : vector<8x32xf32>
    %243 = vector.extract_strided_slice %230 {offsets = [0, 64], sizes = [8, 32], strides = [1, 1]} : vector<8x256xf32> to vector<8x32xf32>
    %244 = vector.extract_strided_slice %230 {offsets = [0, 96], sizes = [8, 32], strides = [1, 1]} : vector<8x256xf32> to vector<8x32xf32>
    %245 = arith.negf %243 : vector<8x32xf32>
    %246 = math.exp %245 : vector<8x32xf32>
    %cst_73 = arith.constant 1.000000e+00 : f32
    %247 = vector.broadcast %cst_73 : f32 to vector<8x32xf32>
    %248 = arith.addf %247, %246 : vector<8x32xf32>
    %249 = arith.divf %247, %248 : vector<8x32xf32>
    %250 = arith.mulf %243, %249 : vector<8x32xf32>
    %251 = arith.mulf %250, %244 : vector<8x32xf32>
    %252 = vector.extract_strided_slice %228 {offsets = [0, 1], sizes = [8, 1], strides = [1, 1]} : vector<8x4xf32> to vector<8x1xf32>
    %253 = vector.broadcast %252 : vector<8x1xf32> to vector<8x32xf32>
    %254 = arith.mulf %251, %253 : vector<8x32xf32>
    %255 = vector.extract_strided_slice %230 {offsets = [0, 128], sizes = [8, 32], strides = [1, 1]} : vector<8x256xf32> to vector<8x32xf32>
    %256 = vector.extract_strided_slice %230 {offsets = [0, 160], sizes = [8, 32], strides = [1, 1]} : vector<8x256xf32> to vector<8x32xf32>
    %257 = arith.negf %255 : vector<8x32xf32>
    %258 = math.exp %257 : vector<8x32xf32>
    %cst_74 = arith.constant 1.000000e+00 : f32
    %259 = vector.broadcast %cst_74 : f32 to vector<8x32xf32>
    %260 = arith.addf %259, %258 : vector<8x32xf32>
    %261 = arith.divf %259, %260 : vector<8x32xf32>
    %262 = arith.mulf %255, %261 : vector<8x32xf32>
    %263 = arith.mulf %262, %256 : vector<8x32xf32>
    %264 = vector.extract_strided_slice %228 {offsets = [0, 2], sizes = [8, 1], strides = [1, 1]} : vector<8x4xf32> to vector<8x1xf32>
    %265 = vector.broadcast %264 : vector<8x1xf32> to vector<8x32xf32>
    %266 = arith.mulf %263, %265 : vector<8x32xf32>
    %267 = vector.extract_strided_slice %230 {offsets = [0, 192], sizes = [8, 32], strides = [1, 1]} : vector<8x256xf32> to vector<8x32xf32>
    %268 = vector.extract_strided_slice %230 {offsets = [0, 224], sizes = [8, 32], strides = [1, 1]} : vector<8x256xf32> to vector<8x32xf32>
    %269 = arith.negf %267 : vector<8x32xf32>
    %270 = math.exp %269 : vector<8x32xf32>
    %cst_75 = arith.constant 1.000000e+00 : f32
    %271 = vector.broadcast %cst_75 : f32 to vector<8x32xf32>
    %272 = arith.addf %271, %270 : vector<8x32xf32>
    %273 = arith.divf %271, %272 : vector<8x32xf32>
    %274 = arith.mulf %267, %273 : vector<8x32xf32>
    %275 = arith.mulf %274, %268 : vector<8x32xf32>
    %276 = vector.extract_strided_slice %228 {offsets = [0, 3], sizes = [8, 1], strides = [1, 1]} : vector<8x4xf32> to vector<8x1xf32>
    %277 = vector.broadcast %276 : vector<8x1xf32> to vector<8x32xf32>
    %278 = arith.mulf %275, %277 : vector<8x32xf32>
    %279 = tpu.concatenate %242, %254, %266, %278 in 1 : vector<8x32xf32>, vector<8x32xf32>, vector<8x32xf32>, vector<8x32xf32> -> vector<8x128xf32>
    %c0_76 = arith.constant 0 : index
    %c0_77 = arith.constant 0 : index
    %280 = vector.load %arg14[%c0_76, %c0_77] : memref<128x64xf32, #tpu.memory_space<vmem>>, vector<128x64xf32>
    %cst_78 = arith.constant dense<0.000000e+00> : vector<8x64xf32>
    %281 = tpu.matmul %279, %280, %cst_78 {dimension_numbers = #tpu.dot_dimension_numbers<[1], [0], [0], [1], [0, 0, 1, 1], [], []>} : vector<8x128xf32>, vector<128x64xf32>, vector<8x64xf32> -> vector<8x64xf32>
    %282 = arith.addf %281, %191 : vector<8x64xf32>
    %283 = tpu.concatenate %282, %153 in 1 : vector<8x64xf32>, vector<8x64xf32> -> vector<8x128xf32>
    %c0_79 = arith.constant 0 : index
    %c0_80 = arith.constant 0 : index
    %284 = vector.load %arg15[%c0_79, %c0_80] : memref<8x128xf32, #tpu.memory_space<vmem>>, vector<8x128xf32>
    tpu.vector_store %arg15[%c0_79, %c0_80], %283 {strides = array<i32>} : memref<8x128xf32, #tpu.memory_space<vmem>>, vector<8x128xf32>,
    return
  }
}

</mosaic_0001>

<bundles_post_ra>
// kernel: decoder_layer.1
= control target key start
LH: loop header
LB: loop body
LE: loop exit
PB: predicated region body
PF: predicated region fallthrough
CT: control target
= control target key end

     0   :  { %vm53_vm0 = vcmask 523264   ;;  %v2116_v6 = vmov 0.0|0.0   ;;  %vm2117_vm1 = vmmov 0   ;;  %v2118_v12 = vmov 0.0   ;;  %s2119_s19 = smov 64   ;;  %s2120_s20 = smov 72   ;;  %s2732_s0 = inlined_call_operand.vmem [shape: f32[8,64], index: 0, kind: input, shape index: {}, may-alias: {0,1}]   ;;  %s2733_s1 = inlined_call_operand.vmem [shape: f32[8,64], index: 1, kind: input, shape index: {}, may-alias: {0,1}]   ;;  %s2734_s6 = inlined_call_operand.vmem [shape: f32[64,128], index: 6, kind: input, shape index: {}]   ;;  %s2735_s3 = inlined_call_operand.vmem [shape: f32[8,8], index: 3, kind: input, shape index: {}]   ;;  %s2736_s2 = inlined_call_operand.vmem [shape: f32[8,8], index: 2, kind: input, shape index: {}]   ;;  %s2737_s4 = inlined_call_operand.vmem [shape: f32[1,64], index: 4, kind: input, shape index: {}]   ;;  %s2738_s7 = inlined_call_operand.vmem [shape: f32[1,128], index: 7, kind: input, shape index: {}]   ;;  %s2739_s8 = inlined_call_operand.vmem [shape: f32[64,64], index: 8, kind: input, shape index: {}]   ;;  %s2740_s11 = inlined_call_operand.vmem [shape: f32[64,64], index: 11, kind: input, shape index: {}]   ;;  %s2741_s9 = inlined_call_operand.vmem [shape: f32[64,4], index: 9, kind: input, shape index: {}]   ;;  %s2742_s5 = inlined_call_operand.vmem [shape: f32[1,64], index: 5, kind: input, shape index: {}]   ;;  %s2743_s12 = inlined_call_operand.vmem [shape: f32[32,64], index: 12, kind: input, shape index: {}]   ;;  %s2744_s13 = inlined_call_operand.vmem [shape: f32[64,256], index: 13, kind: input, shape index: {}]   ;;  %s2745_s14 = inlined_call_operand.vmem [shape: f32[128,64], index: 14, kind: input, shape index: {}]   ;;  %s2746_s10 = inlined_call_operand.vmem [shape: f32[1,64], index: 10, kind: input, shape index: {}]   ;;  %s2747_s15 = inlined_call_operand.vmem [shape: f32[8,128], index: 15, kind: output, shape index: {}]  }
   0x1   :  { %v2220_v0 = vld [vmem:[%s2732_s0] sm:$0xff]  ;;  %v70_v4 = vld [vmem:[%s2734_s6 + $0x8] sm:$0xff]  ;;  %1956 = vmatprep.subr.bf16.mxu0 %v2116_v6  ;;  %v71_v7 = vld [vmem:[%s2734_s6 + $0x10] sm:$0xff]  ;;  %1810 = vmatprep.mubr.msk.f32.mxu0 %vm2117_vm1, %v2118_v12  ;;  %s2122_s23 = smov 8   ;;  %s2124_s24 = smov 24   ;;  %vm195_vm2 = vcmask 64512   ;;  %v232_v60 = vlaneseq }
   0x2   :  { %v52_v1 = vmul.f32 %v2220_v0, %v2220_v0  ;;  %v69_v3 = vld [vmem:[%s2734_s6] sm:$0xff]  ;;  %v72_v8 = vld [vmem:[%s2734_s6 + $0x18] sm:$0xff]  ;;  %v74_v11 = vld [vmem:[%s2734_s6 + $0x28] sm:$0xff]  ;;  %1813 = vmatprep.subr.mxu1 %v2118_v12  ;;  %1815 = vmatprep.mubr.msk.f32.mxu1 %vm2117_vm1, %v2118_v12  ;;  %vm258_vm3 = vcmask 130048   ;;  %s2125_s25 = smov 32   ;;  %s2126_s26 = smov 112  }
   0x3   :  { %v1957_v5 = vpack.c.bf16 %v70_v4, %v69_v3  ;;  %v1960_v9 = vpack.c.bf16 %v72_v8, %v71_v7  ;;  %v73_v10 = vld [vmem:[%s2734_s6 + $0x20] sm:$0xff]  ;;  %v75_v14 = vld [vmem:[%s2734_s6 + $0x30] sm:$0xff]  ;;  %v76_v15 = vld [vmem:[%s2734_s6 + $0x38] sm:$0xff]  ;;  %v2327_v61 = vshrl.u32 %v232_v60, 7  ;;  %v2329_v62 = vand.u32 127, %v232_v60  ;;  %s2127_s27 = smov 88  }
   0x4   :  { %v54_v2 = vsel %vm53_vm0, %v52_v1, 0.0  ;;  %v1963_v13 = vpack.c.bf16 %v74_v11, %v73_v10  ;;  %v1966_v16 = vpack.c.bf16 %v76_v15, %v75_v14  ;;  %v2262_v17 = vld [vmem:[%s2735_s3] sm:$0xff]  ;;  %s2128_s28 = smov 80   ;;  %s2129_s29 = smov 40   ;;  %vm1026_vm5 = vcmask 261120  }
   0x5   :  { %55 = vadd.xlane.f32.xlu0 %v54_v2  ;;  %1958 = vmatpush3.bf16.msra.mxu0 %v1957_v5  ;;  %v2270_v18 = vld [vmem:[%s2736_s2] sm:$0xff]  ;;  %vm236_vm4 = vcmp.le.s32.totalorder %v2329_v62, %v2327_v61  ;;  %s2130_s30 = smov 56   ;;  %s2131_s16 = smov 48   ;;  %vm1028_vm6 = vcmask 392192   ;;  %vm1393_vm7 = vcmask 31744   ;;  %vm1596_vm15 = vcmask 785408  }
   0x6   :  { %1959 = vmatprep.subr.bf16.mxu0 %v2116_v6  ;;  %178 = vrot.lane.b32.xlu1 %v2262_v17, %s2119_s19  ;;  %v1694_v23 = vld [vmem:[%s2737_s4] ss:$0 sm:$0xff]  ;;  %s2121_s4 = smov 120   ;;  %s2132_s17 = smov 96  }
   0x7   :  { %v1695_v26 = vld [vmem:[%s2738_s7] ss:$0 sm:$0xff]  ;;  %s2123_s7 = smov 16  }
   0x9   :  { %1961 = vmatpush3.bf16.msra.mxu0 %v1960_v9 }
   0xa   :  { %1962 = vmatprep.subr.bf16.mxu0 %v2116_v6  ;;  %160 = vrot.lane.b32.xlu1 %v2270_v18, %s2119_s19 }
   0xd   :  { %1964 = vmatpush3.bf16.msra.mxu0 %v1963_v13 }
   0xe   :  { %1965 = vmatprep.subr.bf16.mxu0 %v2116_v6  ;;  %174 = vrot.lane.b32.xlu1 %v2270_v18, %s2120_s20 }
  0x11   :  { %1967 = vmatpush3.bf16.msra.mxu0 %v1966_v16 }
  0x12   :  { %1843 = vmatprep.subr.mxu0 %v2118_v12 }
  0x1b   :  { %165 = vrot.lane.b32.xlu0 %v2262_v17, %s2120_s20 }
  0x78   :  { %v179_v32 = vpop.permute.xlu1 %178 }
  0x7c   :  { %v161_v34 = vpop.permute.xlu1 %160 }
  0x80   :  { %v175_v35 = vpop.permute.xlu1 %174 }
  0x92   :  { %v56_v19 = vpop.xlane.xlu0 %55 }
  0x93   :  { %v58_v20 = vmul.f32 0.015625, %v56_v19 }
  0x95   :  { %v59_v21 = vadd.f32 1e-06, %v58_v20 }
  0x96   :  { %v166_v28 = vpop.permute.xlu0 %165 }
  0x97   :  { %2076 = vrsqrt.f32 %v59_v21 }
  0xa1   :  { %v2077_v22 = vpop.eup %2076 }
  0xa2   :  { %v61_v24 = vmul.f32 %v2077_v22, %v2220_v0 }
  0xa4   :  { %v68_v25 = vmul.f32 %v1694_v23, %v61_v24 }
  0xa6   :  { %1811 = vmatmul.mubr.msk.f32.vlgmr.msra.gmra.mrb[0].mxu0 %vm53_vm0, %v68_v25 }
  0xa7   :  { %1845 = vmatprep.mubr.msk.f32.mxu0 %vm2117_vm1, %v2118_v12 }
 0x179   :  { %v153_v27 = vpop.f32.mrb[0].mxu0 }
 0x17a   :  { %v2285_v29 = vadd.f32 %v1695_v26, %v153_v27  ;;  %v1812_v30 = vpop.f32.mrb[1].mxu0 }
 0x17c   :  { %v168_v31 = vmul.f32 %v166_v28, %v2285_v29  ;;  %v181_v33 = vmul.f32 %v179_v32, %v2285_v29  ;;  %v163_v36 = vmul.f32 %v161_v34, %v2285_v29  ;;  %v177_v39 = vmul.f32 %v175_v35, %v2285_v29 }
 0x17d   :  { %v251_v44 = vmul.f32 %v2262_v17, %v2285_v29  ;;  %v237_v50 = vmul.f32 %v2270_v18, %v2285_v29 }
 0x17e   :  { %170 = vrot.lane.b32.xlu1 %v168_v31, %s2121_s4 }
 0x182   :  { %183 = vrot.lane.b32.xlu1 %v181_v33, %s2122_s23 }
 0x186   :  { %238 = vrot.lane.b32.xlu1 %v2262_v17, %s2122_s23 }
 0x18a   :  { %247 = vrot.lane.b32.xlu1 %v2270_v18, %s2122_s23 }
 0x1f0   :  { %v171_v37 = vpop.permute.xlu1 %170 }
 0x1f1   :  { %v173_v38 = vsub.f32 %v163_v36, %v171_v37 }
 0x1f3   :  { %188 = vrot.lane.b32.xlu0 %v173_v38, %s2119_s19 }
 0x1f4   :  { %v184_v40 = vpop.permute.xlu1 %183 }
 0x1f5   :  { %v186_v41 = vadd.f32 %v184_v40, %v177_v39 }
 0x1f7   :  { %192 = vrot.lane.b32.xlu1 %v186_v41, %s2119_s19 }
 0x1f8   :  { %v239_v42 = vpop.permute.xlu1 %238 }
 0x1f9   :  { %v241_v43 = vmul.f32 %v239_v42, %v2285_v29 }
 0x1fb   :  { %253 = vrot.lane.b32.xlu1 %v251_v44, %s2122_s23  ;;  %243 = vrot.lane.b32.xlu0 %v241_v43, %s2121_s4 }
 0x1fc   :  { %v248_v45 = vpop.permute.xlu1 %247 }
 0x1fd   :  { %v250_v49 = vmul.f32 %v248_v45, %v2285_v29 }
 0x1ff   :  { %442 = vrot.lane.b32.xlu1 %v2262_v17, %s2123_s7  ;;  %429 = vrot.lane.b32.xlu0 %v2262_v17, %s2124_s24 }
 0x203   :  { %425 = vrot.lane.b32.xlu1 %v2270_v18, %s2123_s7 }
 0x207   :  { %438 = vrot.lane.b32.xlu1 %v2270_v18, %s2124_s24 }
 0x265   :  { %v189_v46 = vpop.permute.xlu0 %188 }
 0x269   :  { %v193_v47 = vpop.permute.xlu1 %192 }
 0x26a   :  { %v2311_v48 = vsel %vm195_vm2, %v189_v46, %v193_v47 }
 0x26b   :  { %1814 = vmatpush3.xpose.msk.msra.mxu1 %vm258_vm3, %v2311_v48 }
 0x26c   :  { %1818 = vmatprep.subr.mxu1 %v2118_v12 }
 0x26d   :  { %v244_v51 = vpop.permute.xlu0 %243  ;;  %v254_v52 = vpop.permute.xlu1 %253 }
 0x26e   :  { %v246_v53 = vsub.f32 %v237_v50, %v244_v51  ;;  %v256_v54 = vadd.f32 %v254_v52, %v250_v49 }
 0x270   :  { %v257_v55 = vsel %vm195_vm2, %v246_v53, %v256_v54 }
 0x271   :  { %v430_v56 = vpop.permute.xlu0 %429  ;;  %1816 = vmatmul.mubr.msk.f32.vlgmr.msra.gmra.mrb[0].mxu1 %vm258_vm3, %v257_v55  ;;  %v443_v58 = vpop.permute.xlu1 %442 }
 0x272   :  { %v432_v57 = vmul.f32 %v430_v56, %v2285_v29  ;;  %1820 = vmatprep.mubr.msk.f32.mxu1 %vm2117_vm1, %v2118_v12  ;;  %v445_v59 = vmul.f32 %v443_v58, %v2285_v29 }
 0x274   :  { %434 = vrot.lane.b32.xlu1 %v432_v57, %s2121_s4 }
 0x275   :  { %v426_v5 = vpop.permute.xlu1 %425 }
 0x276   :  { %v428_v9 = vmul.f32 %v426_v5, %v2285_v29 }
 0x278   :  { %447 = vrot.lane.b32.xlu1 %v445_v59, %s2122_s23 }
 0x279   :  { %v439_v7 = vpop.permute.xlu1 %438 }
 0x27a   :  { %v441_v27 = vmul.f32 %v439_v7, %v2285_v29 }
 0x2e6   :  { %v435_v8 = vpop.permute.xlu1 %434 }
 0x2e7   :  { %v437_v10 = vsub.f32 %v428_v9, %v435_v8 }
 0x2ea   :  { %v448_v25 = vpop.permute.xlu1 %447 }
 0x2eb   :  { %v450_v30 = vadd.f32 %v448_v25, %v441_v27 }
 0x344   :  { %v331_v63 = vpop.f32.mrb[0].mxu1 }
 0x345   :  { %v335_v1 = vmul.f32 0.25, %v331_v63  ;;  %v1817_v2 = vpop.f32.mrb[1].mxu1 }
 0x347   :  { %v336_v3 = vsel %vm236_vm4, %v335_v1, -1e+30 }
 0x348   :  { %v337_v4 = vsel %vm195_vm2, %v336_v3, -inf }
 0x349   :  { %338 = vmax.xlane.f32.xlu0 %v337_v4 }
 0x35f   :  { %349 = vrot.lane.b32.xlu0 %v2285_v29, %s2125_s25 }
 0x363   :  { %452 = vrot.lane.b32.xlu0 %v437_v10, %s2126_s26 }
 0x367   :  { %201 = vrot.lane.b32.xlu0 %v2262_v17, %s2127_s27 }
 0x36b   :  { %214 = vrot.lane.b32.xlu0 %v2262_v17, %s2128_s28 }
 0x36f   :  { %623 = vrot.lane.b32.xlu0 %v2262_v17, %s2129_s29 }
 0x373   :  { %636 = vrot.lane.b32.xlu0 %v2262_v17, %s2125_s25 }
 0x377   :  { %823 = vrot.lane.b32.xlu0 %v2262_v17, %s2130_s30 }
 0x37b   :  { %836 = vrot.lane.b32.xlu0 %v2262_v17, %s2131_s16 }
 0x37f   :  { %197 = vrot.lane.b32.xlu0 %v2270_v18, %s2128_s28 }
 0x383   :  { %210 = vrot.lane.b32.xlu0 %v2270_v18, %s2127_s27 }
 0x3d6   :  { %v339_v11 = vpop.xlane.xlu0 %338 }
 0x3d7   :  { %v340_v13 = vsub.f32 %v336_v3, %v339_v11 }
 0x3d9   :  { %v341_v14 = vmul.f32 1.442695, %v340_v13 }
 0x3da   :  { %v2354_v15 = vpop.permute.xlu0 %349 }
 0x3db   :  { %2078 = vpow2.f32 %v341_v14  ;;  %1819 = vmatpush3.msra.mxu1 %v2354_v15 }
 0x3dc   :  { %1823 = vmatprep.subr.mxu1 %v2118_v12 }
 0x3de   :  { %v453_v16 = vpop.permute.xlu0 %452 }
 0x3e2   :  { %v202_v19 = vpop.permute.xlu0 %201 }
 0x3e3   :  { %v204_v20 = vmul.f32 %v202_v19, %v2285_v29 }
 0x3e5   :  { %v2079_v17 = vpop.eup %2078  ;;  %206 = vrot.lane.b32.xlu0 %v204_v20, %s2121_s4 }
 0x3e6   :  { %v215_v21 = vpop.permute.xlu0 %214  ;;  %v343_v22 = vsel %vm195_vm2, %v2079_v17, 0.0 }
 0x3e7   :  { %v217_v23 = vmul.f32 %v215_v21, %v2285_v29  ;;  %344 = vadd.xlane.f32.xlu1 %v343_v22 }
 0x3e9   :  { %219 = vrot.lane.b32.xlu0 %v217_v23, %s2122_s23 }
 0x3ea   :  { %v624_v24 = vpop.permute.xlu0 %623 }
 0x3eb   :  { %v626_v26 = vmul.f32 %v624_v24, %v2285_v29 }
 0x3ed   :  { %619 = vrot.lane.b32.xlu0 %v2270_v18, %s2125_s25 }
 0x3ee   :  { %v637_v28 = vpop.permute.xlu0 %636 }
 0x3ef   :  { %v639_v8 = vmul.f32 %v637_v28, %v2285_v29 }
 0x3f1   :  { %632 = vrot.lane.b32.xlu0 %v2270_v18, %s2129_s29 }
 0x3f2   :  { %v824_v31 = vpop.permute.xlu0 %823 }
 0x3f3   :  { %v826_v32 = vmul.f32 %v824_v31, %v2285_v29 }
 0x3f5   :  { %628 = vrot.lane.b32.xlu0 %v626_v26, %s2121_s4 }
 0x3f6   :  { %v837_v33 = vpop.permute.xlu0 %836 }
 0x3f7   :  { %v839_v34 = vmul.f32 %v837_v33, %v2285_v29 }
 0x3f8   :  { %456 = vrot.lane.b32.xlu1 %v450_v30, %s2126_s26 }
 0x3f9   :  { %819 = vrot.lane.b32.xlu0 %v2270_v18, %s2131_s16 }
 0x3fa   :  { %v198_v35 = vpop.permute.xlu0 %197 }
 0x3fb   :  { %v200_v37 = vmul.f32 %v198_v35, %v2285_v29 }
 0x3fd   :  { %832 = vrot.lane.b32.xlu0 %v2270_v18, %s2130_s30 }
 0x3fe   :  { %v211_v36 = vpop.permute.xlu0 %210 }
 0x3ff   :  { %v213_v40 = vmul.f32 %v211_v36, %v2285_v29 }
 0x401   :  { %828 = vrot.lane.b32.xlu0 %v826_v32, %s2121_s4 }
 0x405   :  { %841 = vrot.lane.b32.xlu0 %v839_v34, %s2122_s23 }
 0x457   :  { %v207_v38 = vpop.permute.xlu0 %206 }
 0x458   :  { %v209_v39 = vsub.f32 %v200_v37, %v207_v38 }
 0x45a   :  { %224 = vrot.lane.b32.xlu0 %v209_v39, %s2131_s16 }
 0x45b   :  { %v220_v18 = vpop.permute.xlu0 %219 }
 0x45c   :  { %v222_v41 = vadd.f32 %v220_v18, %v213_v40 }
 0x45e   :  { %228 = vrot.lane.b32.xlu0 %v222_v41, %s2131_s16 }
 0x45f   :  { %v620_v42 = vpop.permute.xlu0 %619 }
 0x460   :  { %v622_v44 = vmul.f32 %v620_v42, %v2285_v29 }
 0x463   :  { %v633_v43 = vpop.permute.xlu0 %632 }
 0x464   :  { %v635_v11 = vmul.f32 %v633_v43, %v2285_v29 }
 0x467   :  { %v629_v45 = vpop.permute.xlu0 %628 }
 0x468   :  { %v631_v46 = vsub.f32 %v622_v44, %v629_v45 }
 0x46a   :  { %646 = vrot.lane.b32.xlu0 %v631_v46, %s2132_s17 }
 0x46b   :  { %v820_v47 = vpop.permute.xlu0 %819 }
 0x46c   :  { %v822_v50 = vmul.f32 %v820_v47, %v2285_v29 }
 0x46f   :  { %v833_v49 = vpop.permute.xlu0 %832 }
 0x473   :  { %v829_v51 = vpop.permute.xlu0 %828 }
 0x474   :  { %v831_v52 = vsub.f32 %v822_v50, %v829_v51  ;;  %v345_v53 = vpop.xlane.xlu1 %344 }
 0x475   :  { %2080 = vrcp.f32 %v345_v53 }
 0x477   :  { %v842_v58 = vpop.permute.xlu0 %841 }
 0x478   :  { %v457_v56 = vpop.permute.xlu1 %456 }
 0x479   :  { %v459_v57 = vsel %vm195_vm2, %v453_v16, %v457_v56  ;;  %v835_v16 = vmul.f32 %v833_v49, %v2285_v29 }
 0x47b   :  { %v844_v19 = vadd.f32 %v842_v58, %v835_v16 }
 0x47f   :  { %v2081_v54 = vpop.eup %2080 }
 0x480   :  { %v347_v55 = vmul.f32 %v2081_v54, %v2079_v17 }
 0x482   :  { %1821 = vmatmul.mubr.msk.f32.vlgmr.msra.gmra.mrb[2].mxu1 %vm195_vm2, %v347_v55 }
 0x483   :  { %1824 = vmatpush3.xpose.msk.msra.mxu1 %vm258_vm3, %v2311_v48  ;;  %1825 = vmatprep.mubr.msk.f32.mxu1 %vm2117_vm1, %v2118_v12 }
 0x484   :  { %1828 = vmatprep.subr.mxu1 %v2118_v12 }
 0x486   :  { %1826 = vmatmul.mubr.msk.f32.vlgmr.msra.gmra.mrb[4].mxu1 %vm258_vm3, %v459_v57 }
 0x487   :  { %1829 = vmatpush3.msra.mxu1 %v2354_v15  ;;  %1830 = vmatprep.mubr.msk.f32.mxu1 %vm2117_vm1, %v2118_v12 }
 0x488   :  { %1833 = vmatprep.subr.mxu1 %v2118_v12 }
 0x4cc   :  { %v225_v59 = vpop.permute.xlu0 %224 }
 0x4d0   :  { %v229_v60 = vpop.permute.xlu0 %228 }
 0x4d1   :  { %v231_v48 = vsel %vm195_vm2, %v225_v59, %v229_v60  ;;  %v1031_v59 = vld [vmem:[%s2739_s8 + $0x8] sm:$0xff]  ;;  %v1032_v60 = vld [vmem:[%s2739_s8 + $0x10] sm:$0xff] }
 0x4d2   :  { %1844 = vmatpush3.xpose.msk.msra.mxu0 %vm258_vm3, %v231_v48 }
 0x4d3   :  { %1968 = vmatprep.subr.bf16.mxu0 %v2116_v6 }
 0x4dc   :  { %v647_v21 = vpop.permute.xlu0 %646 }
 0x555   :  { %v2400_v63 = vpop.f32.mrb[2].mxu1 }
 0x556   :  { %v1822_v1 = vpop.f32.mrb[3].mxu1 }
 0x557   :  { %v1033_v1 = vld [vmem:[%s2739_s8 + $0x18] sm:$0xff] }
 0x559   :  { %v529_v2 = vpop.f32.mrb[4].mxu1 }
 0x55a   :  { %v533_v3 = vmul.f32 0.25, %v529_v2  ;;  %v1827_v4 = vpop.f32.mrb[5].mxu1  ;;  %v1972_v2 = vpack.c.bf16 %v1033_v1, %v1032_v60 }
 0x55b   :  { %v1035_v4 = vld [vmem:[%s2739_s8 + $0x28] sm:$0xff] }
 0x55c   :  { %v534_v5 = vsel %vm236_vm4, %v533_v3, -1e+30  ;;  %v1034_v3 = vld [vmem:[%s2739_s8 + $0x20] sm:$0xff] }
 0x55d   :  { %v535_v7 = vsel %vm195_vm2, %v534_v5, -inf }
 0x55e   :  { %536 = vmax.xlane.f32.xlu1 %v535_v7  ;;  %v1036_v7 = vld [vmem:[%s2739_s8 + $0x30] sm:$0xff] }
 0x56f   :  { %641 = vrot.lane.b32.xlu1 %v639_v8, %s2122_s23  ;;  %v1037_v8 = vld [vmem:[%s2739_s8 + $0x38] sm:$0xff] }
 0x5eb   :  { %v537_v9 = vpop.xlane.xlu1 %536 }
 0x5ec   :  { %v538_v10 = vsub.f32 %v534_v5, %v537_v9  ;;  %v1975_v5 = vpack.c.bf16 %v1035_v4, %v1034_v3  ;;  %v1978_v9 = vpack.c.bf16 %v1037_v8, %v1036_v7 }
 0x5ee   :  { %v539_v13 = vmul.f32 1.442695, %v538_v10 }
 0x5ef   :  { %v642_v14 = vpop.permute.xlu1 %641 }
 0x5f0   :  { %2082 = vpow2.f32 %v539_v13  ;;  %v644_v15 = vadd.f32 %v642_v14, %v635_v11 }
 0x5f2   :  { %650 = vrot.lane.b32.xlu0 %v644_v15, %s2132_s17 }
 0x5f6   :  { %846 = vrot.lane.b32.xlu0 %v831_v52, %s2128_s28 }
 0x5fa   :  { %v2083_v20 = vpop.eup %2082  ;;  %850 = vrot.lane.b32.xlu0 %v844_v19, %s2128_s28 }
 0x5fb   :  { %v541_v17 = vsel %vm195_vm2, %v2083_v20, 0.0 }
 0x5fc   :  { %542 = vadd.xlane.f32.xlu1 %v541_v17 }
 0x664   :  { %v651_v22 = vpop.permute.xlu0 %650 }
 0x665   :  { %v653_v30 = vsel %vm195_vm2, %v647_v21, %v651_v22 }
 0x668   :  { %v847_v23 = vpop.permute.xlu0 %846 }
 0x66c   :  { %v851_v24 = vpop.permute.xlu0 %850 }
 0x66d   :  { %v853_v25 = vsel %vm195_vm2, %v847_v23, %v851_v24 }
 0x66e   :  { %1846 = vmatmul.mubr.msk.f32.vlgmr.msra.gmra.mrb[2].mxu0 %vm258_vm3, %v853_v25 }
 0x66f   :  { %1869 = vmatprep.mubr.msk.f32.mxu0 %vm2117_vm1, %v2118_v12 }
 0x689   :  { %v543_v26 = vpop.xlane.xlu1 %542 }
 0x68a   :  { %2084 = vrcp.f32 %v543_v26 }
 0x694   :  { %v2085_v27 = vpop.eup %2084 }
 0x695   :  { %v545_v28 = vmul.f32 %v2085_v27, %v2083_v20  ;;  %v1128_v27 = vld [vmem:[%s2740_s11 + $0x8] sm:$0xff] }
 0x697   :  { %1831 = vmatmul.mubr.msk.f32.vlgmr.msra.gmra.mrb[6].mxu1 %vm195_vm2, %v545_v28 }
 0x698   :  { %1834 = vmatpush3.xpose.msk.msra.mxu1 %vm258_vm3, %v231_v48  ;;  %1835 = vmatprep.mubr.msk.f32.mxu1 %vm2117_vm1, %v2118_v12 }
 0x699   :  { %1838 = vmatprep.subr.mxu1 %v2118_v12 }
 0x69b   :  { %1836 = vmatmul.mubr.msk.f32.vlgmr.msra.gmra.mrb[8].mxu1 %vm258_vm3, %v653_v30  ;;  %v1316_v30 = vld [vmem:[%s2741_s9 + $0x8] sm:$0xff] }
 0x69c   :  { %1840 = vmatprep.mubr.msk.f32.mxu1 %vm2117_vm1, %v2118_v12 }
 0x741   :  { %v923_v31 = vpop.f32.mrb[2].mxu0 }
 0x742   :  { %v927_v32 = vmul.f32 0.25, %v923_v31  ;;  %v1847_v33 = vpop.f32.mrb[3].mxu0 }
 0x743   :  { %v1130_v33 = vld [vmem:[%s2740_s11 + $0x18] sm:$0xff] }
 0x744   :  { %v928_v34 = vsel %vm236_vm4, %v927_v32, -1e+30  ;;  %v1129_v32 = vld [vmem:[%s2740_s11 + $0x10] sm:$0xff] }
 0x745   :  { %v929_v35 = vsel %vm195_vm2, %v928_v34, -inf }
 0x746   :  { %930 = vmax.xlane.f32.xlu1 %v929_v35  ;;  %v1984_v35 = vpack.c.bf16 %v1130_v33, %v1129_v32  ;;  %v1450_v32 = vld [vmem:[%s2744_s13] sm:$0xff]  ;;  %v1452_v33 = vld [vmem:[%s2744_s13 + $0x10] sm:$0xff] }
 0x76a   :  { %v615_v36 = vpop.f32.mrb[6].mxu1 }
 0x76b   :  { %v1832_v37 = vpop.f32.mrb[7].mxu1 }
 0x76e   :  { %v726_v38 = vpop.f32.mrb[8].mxu1 }
 0x76f   :  { %v730_v39 = vmul.f32 0.25, %v726_v38  ;;  %v1837_v40 = vpop.f32.mrb[9].mxu1  ;;  %v1131_v38 = vld [vmem:[%s2740_s11 + $0x20] sm:$0xff] }
 0x770   :  { %v1319_v40 = vld [vmem:[%s2741_s9 + $0x20] sm:$0xff] }
 0x771   :  { %v731_v18 = vsel %vm236_vm4, %v730_v39, -1e+30  ;;  %v1132_v39 = vld [vmem:[%s2740_s11 + $0x28] sm:$0xff] }
 0x772   :  { %v732_v41 = vsel %vm195_vm2, %v731_v18, -inf }
 0x773   :  { %733 = vmax.xlane.f32.xlu0 %v732_v41  ;;  %v1320_v41 = vld [vmem:[%s2741_s9 + $0x28] sm:$0xff] }
 0x789   :  { %1014 = vrot.lane.b32.xlu0 %v615_v36, %s2123_s7  ;;  %v1318_v36 = vld [vmem:[%s2741_s9 + $0x18] sm:$0xff] }
 0x7d3   :  { %v931_v42 = vpop.xlane.xlu1 %930 }
 0x7d4   :  { %v932_v43 = vsub.f32 %v928_v34, %v931_v42  ;;  %v1317_v34 = vld [vmem:[%s2741_s9 + $0x10] sm:$0xff]  ;;  %v2005_v42 = vpack.c.bf16 %v1320_v41, %v1319_v40  ;;  %v1454_v41 = vld [vmem:[%s2744_s13 + $0x20] sm:$0xff] }
 0x7d5   :  { %v2002_v37 = vpack.c.bf16 %v1318_v36, %v1317_v34  ;;  %v1457_v36 = vld [vmem:[%s2744_s13 + $0x38] sm:$0xff] }
 0x7d6   :  { %v933_v44 = vmul.f32 1.442695, %v932_v43  ;;  %v1133_v43 = vld [vmem:[%s2740_s11 + $0x30] sm:$0xff] }
 0x7d8   :  { %2086 = vpow2.f32 %v933_v44  ;;  %v1134_v44 = vld [vmem:[%s2740_s11 + $0x38] sm:$0xff] }
 0x7e2   :  { %v2087_v45 = vpop.eup %2086 }
 0x7e3   :  { %v935_v46 = vsel %vm195_vm2, %v2087_v45, 0.0 }
 0x7e4   :  { %936 = vadd.xlane.f32.xlu1 %v935_v46  ;;  %v1990_v46 = vpack.c.bf16 %v1134_v44, %v1133_v43  ;;  %v1459_v43 = vld [vmem:[%s2744_s13 + $0x48] sm:$0xff]  ;;  %v1461_v44 = vld [vmem:[%s2744_s13 + $0x58] sm:$0xff] }
 0x800   :  { %v734_v47 = vpop.xlane.xlu0 %733 }
 0x801   :  { %v735_v49 = vsub.f32 %v731_v18, %v734_v47  ;;  %v1987_v18 = vpack.c.bf16 %v1132_v39, %v1131_v38  ;;  %v1322_v47 = vld [vmem:[%s2741_s9 + $0x38] sm:$0xff]  ;;  %v2012_v39 = vpack.c.bf16 %v1452_v33, %v1450_v32  ;;  %v1602_v32 = vld [vmem:[%s2745_s14 + $0x20] sm:$0xff]  ;;  %v1603_v33 = vld [vmem:[%s2745_s14 + $0x28] sm:$0xff] }
 0x803   :  { %v736_v50 = vmul.f32 1.442695, %v735_v49 }
 0x804   :  { %v1015_v15 = vpop.permute.xlu0 %1014 }
 0x805   :  { %2088 = vpow2.f32 %v736_v50  ;;  %v1025_v19 = vsel %vm258_vm3, %v2400_v63, %v1015_v15  ;;  %v1127_v63 = vld [vmem:[%s2740_s11] sm:$0xff] }
 0x806   :  { %v1981_v28 = vpack.c.bf16 %v1128_v27, %v1127_v63 }
 0x80f   :  { %v2089_v51 = vpop.eup %2088 }
 0x810   :  { %v738_v61 = vsel %vm195_vm2, %v2089_v51, 0.0 }
 0x811   :  { %739 = vadd.xlane.f32.xlu1 %v738_v61 }
 0x822   :  { %743 = vrot.lane.b32.xlu1 %v2285_v29, %s2123_s7  ;;  %v1030_v29 = vld [vmem:[%s2739_s8] sm:$0xff] }
 0x823   :  { %v1969_v48 = vpack.c.bf16 %v1031_v59, %v1030_v29 }
 0x825   :  { %1970 = vmatpush3.bf16.msra.mxu0 %v1969_v48 }
 0x826   :  { %1971 = vmatprep.subr.bf16.mxu0 %v2116_v6 }
 0x829   :  { %1973 = vmatpush3.bf16.msra.mxu0 %v1972_v2 }
 0x82a   :  { %1974 = vmatprep.subr.bf16.mxu0 %v2116_v6 }
 0x82d   :  { %1976 = vmatpush3.bf16.msra.mxu0 %v1975_v5 }
 0x82e   :  { %1977 = vmatprep.subr.bf16.mxu0 %v2116_v6 }
 0x831   :  { %1979 = vmatpush3.bf16.msra.mxu0 %v1978_v9  ;;  %v1220_v9 = vld [vmem:[%s2743_s12] sm:$0xff] }
 0x832   :  { %1980 = vmatprep.subr.bf16.mxu0 %v2116_v6 }
 0x871   :  { %v937_v52 = vpop.xlane.xlu1 %936 }
 0x89e   :  { %v740_v53 = vpop.xlane.xlu1 %739 }
 0x89f   :  { %2090 = vrcp.f32 %v740_v53  ;;  %v1710_v53 = vld [vmem:[%s2742_s5] ss:$0 sm:$0xff] }
 0x8a0   :  { %2092 = vrcp.f32 %v937_v52 }
 0x8a2   :  { %v744_v54 = vpop.permute.xlu1 %743 }
 0x8a3   :  { %1839 = vmatpush3.msra.mxu1 %v744_v54 }
 0x8a4   :  { %1848 = vmatprep.subr.mxu1 %v2118_v12 }
 0x8a9   :  { %v2091_v55 = vpop.eup %2090 }
 0x8aa   :  { %v742_v56 = vmul.f32 %v2091_v55, %v2089_v51  ;;  %v2093_v57 = vpop.eup %2092 }
 0x8ab   :  { %v939_v58 = vmul.f32 %v2093_v57, %v2087_v45  ;;  %v1321_v45 = vld [vmem:[%s2741_s9 + $0x30] sm:$0xff] }
 0x8ac   :  { %1841 = vmatmul.mubr.msk.f32.vlgmr.msra.gmra.mrb[10].mxu1 %vm195_vm2, %v742_v56  ;;  %v2008_v49 = vpack.c.bf16 %v1322_v47, %v1321_v45  ;;  %v1458_v47 = vld [vmem:[%s2744_s13 + $0x40] sm:$0xff] }
 0x8ad   :  { %1849 = vmatpush3.msra.mxu1 %v744_v54  ;;  %1850 = vmatprep.mubr.msk.f32.mxu1 %vm2117_vm1, %v2118_v12 }
 0x8ae   :  { %1998 = vmatprep.subr.bf16.mxu1 %v2116_v6 }
 0x8b0   :  { %1851 = vmatmul.mubr.msk.f32.vlgmr.msra.gmra.mrb[12].mxu1 %vm195_vm2, %v939_v58 }
 0x8b1   :  { %1918 = vmatprep.mubr.msk.f32.mxu1 %vm2117_vm1, %v2118_v12 }
 0x97f   :  { %v815_v10 = vpop.f32.mrb[10].mxu1 }
 0x980   :  { %1018 = vrot.lane.b32.xlu1 %v815_v10, %s2125_s25  ;;  %v1842_v11 = vpop.f32.mrb[11].mxu1  ;;  %v1221_v10 = vld [vmem:[%s2743_s12 + $0x8] sm:$0xff] }
 0x981   :  { %v1993_v11 = vpack.c.bf16 %v1221_v10, %v1220_v9 }
 0x983   :  { %v1009_v13 = vpop.f32.mrb[12].mxu1 }
 0x984   :  { %1022 = vrot.lane.b32.xlu1 %v1009_v13, %s2131_s16  ;;  %v1852_v14 = vpop.f32.mrb[13].mxu1 }
 0x9f2   :  { %v1019_v16 = vpop.permute.xlu1 %1018 }
 0x9f3   :  { %v1027_v20 = vsel %vm1026_vm5, %v1025_v19, %v1019_v16 }
 0x9f6   :  { %v1023_v17 = vpop.permute.xlu1 %1022 }
 0x9f7   :  { %v1029_v21 = vsel %vm1028_vm6, %v1027_v20, %v1023_v17  ;;  %v1222_v20 = vld [vmem:[%s2743_s12 + $0x10] sm:$0xff]  ;;  %v1223_v17 = vld [vmem:[%s2743_s12 + $0x18] sm:$0xff] }
 0x9f8   :  { %1870 = vmatmul.mubr.msk.f32.vlgmr.msra.gmra.mrb[4].mxu0 %vm53_vm0, %v1029_v21  ;;  %v1996_v21 = vpack.c.bf16 %v1223_v17, %v1222_v20  ;;  %v2134_v20 = vmov 1  }
 0x9f9   :  { %1888 = vmatprep.mubr.msk.f32.mxu0 %vm2117_vm1, %v2118_v12  ;;  %1982 = vmatpush3.bf16.msra.mxu0 %v1981_v28 }
 0x9fa   :  { %1983 = vmatprep.subr.bf16.mxu0 %v2116_v6  ;;  %2071 = vset.pattern.permute.xlu1 %v2134_v20 }
 0x9fd   :  { %1985 = vmatpush3.bf16.msra.mxu0 %v1984_v35  ;;  %v1455_v35 = vld [vmem:[%s2744_s13 + $0x28] sm:$0xff] }
 0x9fe   :  { %1986 = vmatprep.subr.bf16.mxu0 %v2116_v6 }
 0xa01   :  { %1988 = vmatpush3.bf16.msra.mxu0 %v1987_v18  ;;  %v2014_v18 = vpack.c.bf16 %v1457_v36, %v1455_v35  ;;  %v1604_v35 = vld [vmem:[%s2745_s14 + $0x30] sm:$0xff]  ;;  %v1605_v36 = vld [vmem:[%s2745_s14 + $0x38] sm:$0xff] }
 0xa02   :  { %1989 = vmatprep.subr.bf16.mxu0 %v2116_v6 }
 0xa05   :  { %1991 = vmatpush3.bf16.msra.mxu0 %v1990_v46  ;;  %v2018_v46 = vpack.c.bf16 %v1461_v44, %v1459_v43 }
 0xa06   :  { %1992 = vmatprep.subr.bf16.mxu0 %v2116_v6 }
 0xacb   :  { %v1107_v22 = vpop.f32.mrb[4].mxu0 }
 0xacc   :  { %v2485_v23 = vadd.f32 %v1107_v22, %v2220_v0  ;;  %v1871_v24 = vpop.f32.mrb[5].mxu0  ;;  %v1315_v0 = vld [vmem:[%s2741_s9] sm:$0xff]  ;;  %v1451_v22 = vld [vmem:[%s2744_s13 + $0x8] sm:$0xff] }
 0xacd   :  { %v1999_v31 = vpack.c.bf16 %v1316_v30, %v1315_v0  ;;  %v1453_v24 = vld [vmem:[%s2744_s13 + $0x18] sm:$0xff] }
 0xace   :  { %v1112_v25 = vmul.f32 %v2485_v23, %v2485_v23 }
 0xacf   :  { %2000 = vmatpush3.bf16.msra.mxu1 %v1999_v31 }
 0xad0   :  { %v1113_v26 = vsel %vm53_vm0, %v1112_v25, 0.0  ;;  %2001 = vmatprep.subr.bf16.mxu1 %v2116_v6  ;;  %v2010_v25 = vpack.c.bf16 %v1453_v24, %v1451_v22 }
 0xad1   :  { %1114 = vadd.xlane.f32.xlu1 %v1113_v26 }
 0xad3   :  { %2003 = vmatpush3.bf16.msra.mxu1 %v2002_v37 }
 0xad4   :  { %2004 = vmatprep.subr.bf16.mxu1 %v2116_v6 }
 0xad7   :  { %2006 = vmatpush3.bf16.msra.mxu1 %v2005_v42  ;;  %v1456_v42 = vld [vmem:[%s2744_s13 + $0x30] sm:$0xff] }
 0xad8   :  { %2007 = vmatprep.subr.bf16.mxu1 %v2116_v6  ;;  %v2016_v45 = vpack.c.bf16 %v1456_v42, %v1454_v41  ;;  %v1609_v41 = vld [vmem:[%s2745_s14 + $0x58] sm:$0xff] }
 0xadb   :  { %2009 = vmatpush3.bf16.msra.mxu1 %v2008_v49  ;;  %v1460_v49 = vld [vmem:[%s2744_s13 + $0x50] sm:$0xff] }
 0xadc   :  { %2026 = vmatprep.subr.bf16.mxu1 %v2116_v6 }
 0xb5e   :  { %v1115_v50 = vpop.xlane.xlu1 %1114 }
 0xb5f   :  { %v1116_v51 = vmul.f32 0.015625, %v1115_v50  ;;  %v1463_v50 = vld [vmem:[%s2744_s13 + $0x68] sm:$0xff] }
 0xb61   :  { %v1117_v61 = vadd.f32 1e-06, %v1116_v51  ;;  %v1465_v51 = vld [vmem:[%s2744_s13 + $0x78] sm:$0xff] }
 0xb63   :  { %2094 = vrsqrt.f32 %v1117_v61  ;;  %v2022_v61 = vpack.c.bf16 %v1465_v51, %v1463_v50  ;;  %v1610_v50 = vld [vmem:[%s2745_s14 + $0x60] sm:$0xff]  ;;  %v1611_v51 = vld [vmem:[%s2745_s14 + $0x68] sm:$0xff] }
 0xb6d   :  { %v2095_v52 = vpop.eup %2094 }
 0xb6e   :  { %v1119_v54 = vmul.f32 %v2095_v52, %v2485_v23  ;;  %v1462_v52 = vld [vmem:[%s2744_s13 + $0x60] sm:$0xff] }
 0xb70   :  { %v2550_v55 = vmul.f32 %v1710_v53, %v1119_v54  ;;  %v1464_v53 = vld [vmem:[%s2744_s13 + $0x70] sm:$0xff] }
 0xb71   :  { %v2024_v54 = vpack.c.bf16 %v1464_v53, %v1462_v52  ;;  %v1613_v52 = vld [vmem:[%s2745_s14 + $0x78] sm:$0xff] }
 0xb72   :  { %1889 = vmatmul.mubr.msk.f32.vlgmr.msra.gmra.mrb[6].mxu0 %vm53_vm0, %v2550_v55  ;;  %1919 = vmatmul.mubr.msk.f32.vlgmr.msra.gmra.mrb[14].mxu1 %vm53_vm0, %v2550_v55 }
 0xb73   :  { %1899 = vmatprep.mubr.msk.f32.mxu0 %vm2117_vm1, %v2118_v12  ;;  %1953 = vmatprep.mubr.msk.f32.mxu1 %vm2117_vm1, %v2118_v12 }
 0xb74   :  { %1994 = vmatpush3.bf16.msra.mxu0 %v1993_v11 }
 0xb75   :  { %1995 = vmatprep.subr.bf16.mxu0 %v2116_v6 }
 0xb78   :  { %1997 = vmatpush3.bf16.msra.mxu0 %v1996_v21 }
 0xb79   :  { %2011 = vmatprep.subr.bf16.mxu0 %v2010_v25 }
 0xc45   :  { %v1204_v56 = vpop.f32.mrb[6].mxu0  ;;  %v1389_v57 = vpop.f32.mrb[14].mxu1 }
 0xc46   :  { %v1890_v58 = vpop.f32.mrb[7].mxu0  ;;  %v1920_v29 = vpop.f32.mrb[15].mxu1  ;;  %v1394_v59 = vsel %vm1393_vm7, %v1389_v57, -inf  ;;  %v1712_v26 = vmul.f32 -1.442695, %v1204_v56 }
 0xc47   :  { %1395 = vmax.xlane.f32.xlu0 %v1394_v59 }
 0xcd4   :  { %v1396_v60 = vpop.xlane.xlu0 %1395 }
 0xcd5   :  { %v1397_v48 = vsub.f32 %v1389_v57, %v1396_v60 }
 0xcd7   :  { %v1398_v1 = vmul.f32 1.442695, %v1397_v48 }
 0xcd9   :  { %2096 = vpow2.f32 %v1398_v1 }
 0xce3   :  { %v2097_v2 = vpop.eup %2096 }
 0xce4   :  { %v1400_v3 = vsel %vm1393_vm7, %v2097_v2, 0.0 }
 0xce5   :  { %1401 = vadd.xlane.f32.xlu0 %v1400_v3 }
 0xd72   :  { %v1402_v4 = vpop.xlane.xlu0 %1401 }
 0xd73   :  { %2098 = vrcp.f32 %v1402_v4 }
 0xd74   :  { %2100 = vpow2.f32 %v1712_v26 }
 0xd7d   :  { %v2099_v5 = vpop.eup %2098 }
 0xd7e   :  { %v2562_v7 = vmul.f32 %v2099_v5, %v2097_v2  ;;  %v2101_v63 = vpop.eup %2100 }
 0xd7f   :  { %v1211_v27 = vadd.f32 1.0, %v2101_v63  ;;  %v2135_v63 = vmov 3  }
 0xd80   :  { %v1405_v8 = vsel %vm1393_vm7, %v2562_v7, -inf }
 0xd81   :  { %1406 = vmax.xlane.f32.xlu1 %v1405_v8  ;;  %2102 = vrcp.f32 %v1211_v27  ;;  %v2136_v27 = vmov 0  }
 0xd8b   :  { %v2103_v28 = vpop.eup %2102 }
 0xd8c   :  { %v1214_v37 = vmul.f32 %v2103_v28, %v1204_v56 }
 0xe0e   :  { %v1407_v13 = vpop.xlane.xlu1 %1406 }
 0xe0f   :  { %vm1408_vm8 = vcmp.eq.f32.partialorder %v2562_v7, %v1407_v13 }
 0xe10   :  { %v1409_v14 = vsel %vm1408_vm8, %v2329_v62, 4 }
 0xe11   :  { %v1410_v15 = vsel %vm1393_vm7, %v1409_v14, 2147483647 }
 0xe12   :  { %v1412_v16 = vshra.s32 %v1410_v15, 16  ;;  %v1411_v0 = vand.u32 65535, %v1410_v15 }
 0xe14   :  { %v1414_v19 = vcvt.s32.f32 %v1412_v16  ;;  %v1413_v31 = vcvt.s32.f32 %v1411_v0  ;;  %v1600_v0 = vld [vmem:[%s2745_s14 + $0x10] sm:$0xff] }
 0xe16   :  { %1415 = vmin.xlane.f32.xlu0 %v1414_v19 }
 0xe2c   :  { %1216 = vrot.lane.b32.xlu0 %v1204_v56, %s2132_s17 }
 0xea3   :  { %v1416_v30 = vpop.xlane.xlu0 %1415 }
 0xea4   :  { %vm1417_vm9 = vcmp.eq.f32.partialorder %v1414_v19, %v1416_v30  ;;  %v1422_v56 = vcvt.f32.s32 %v1416_v30  ;;  %v2133_v19 = vmov 2   ;;  %v1601_v30 = vld [vmem:[%s2745_s14 + $0x18] sm:$0xff] }
 0xea5   :  { %v1418_v34 = vsel %vm1417_vm9, %v1413_v31, inf  ;;  %2072 = vset.pattern.permute.xlu0 %v2133_v19  ;;  %v2030_v31 = vpack.c.bf16 %v1601_v30, %v1600_v0 }
 0xea6   :  { %1419 = vmin.xlane.f32.xlu1 %v1418_v34  ;;  %v1423_v58 = vshll.u32 %v1422_v56, 16  ;;  %v2033_v34 = vpack.c.bf16 %v1603_v33, %v1602_v32 }
 0xea7   :  { %v1217_v38 = vpop.permute.xlu0 %1216 }
 0xea8   :  { %v1219_v40 = vmul.f32 %v1217_v38, %v1214_v37  ;;  %v2036_v37 = vpack.c.bf16 %v1605_v36, %v1604_v35  ;;  %v1606_v38 = vld [vmem:[%s2745_s14 + $0x40] sm:$0xff] }
 0xeaa   :  { %1900 = vmatmul.mubr.msk.f32.vlgmr.msra.gmra.mrb[8].mxu0 %vm1026_vm5, %v1219_v40 }
 0xeab   :  { %2013 = vmatpush1.bf16.msra.mxu0 %v2012_v39  ;;  %1530 = vmatprep.mubr.f32.mxu0 %v2118_v12  ;;  %v2020_v12 = vpack.c.bf16 %v1460_v49, %v1458_v47  ;;  %v1607_v39 = vld [vmem:[%s2745_s14 + $0x48] sm:$0xff] }
 0xeac   :  { %2015 = vmatprep.subr.bf16.mxu0 %v2014_v18  ;;  %v2039_v40 = vpack.c.bf16 %v1607_v39, %v1606_v38  ;;  %v1608_v18 = vld [vmem:[%s2745_s14 + $0x50] sm:$0xff] }
 0xead   :  { %v2042_v42 = vpack.c.bf16 %v1609_v41, %v1608_v18 }
 0xeaf   :  { %2017 = vmatpush1.bf16.msra.mxu0 %v2016_v45 }
 0xeb0   :  { %2019 = vmatprep.subr.bf16.mxu0 %v2018_v46 }
 0xeb3   :  { %2021 = vmatpush1.bf16.msra.mxu0 %v2020_v12  ;;  %v2045_v12 = vpack.c.bf16 %v1611_v51, %v1610_v50 }
 0xeb4   :  { %2023 = vmatprep.subr.bf16.mxu0 %v2022_v61  ;;  %v1612_v61 = vld [vmem:[%s2745_s14 + $0x70] sm:$0xff] }
 0xeb5   :  { %v2048_v53 = vpack.c.bf16 %v1613_v52, %v1612_v61 }
 0xeb7   :  { %2025 = vmatpush1.bf16.msra.mxu0 %v2024_v54 }
 0xeba   :  { %1717 = vmatmul.mubr.msk.f32.vlgmr.msra.gmra.mrb[10].mxu0 %vm53_vm0, %v2550_v55 }
 0xf33   :  { %v1420_v57 = vpop.xlane.xlu1 %1419 }
 0xf34   :  { %v1421_v29 = vcvt.f32.s32 %v1420_v57 }
 0xf36   :  { %v1424_v59 = vadd.s32 %v1423_v58, %v1421_v29 }
 0xf38   :  { %vm1425_vm10 = vcmp.eq.s32.totalorder %v2329_v62, %v1424_v59 }
 0xf39   :  { %v1426_v60 = vsel %vm1425_vm10, -1e+30, %v2562_v7 }
 0xf3a   :  { %v1427_v48 = vsel %vm1393_vm7, %v1426_v60, -inf }
 0xf3b   :  { %1428 = vmax.xlane.f32.xlu1 %v1427_v48 }
 0xf7d   :  { %v2640_v1 = vpop.f32.mrb[8].mxu0 }
 0xf7e   :  { %v1901_v2 = vpop.f32.mrb[9].mxu0 }
 0xf8d   :  { %v2642_v3 = vpop.f32.mrb[10].mxu0 }
 0xf8e   :  { %v2644_v4 = vpop.f32.mrb[11].mxu0  ;;  %v1718_v43 = vmul.f32 -1.442695, %v2642_v3 }
 0xf8f   :  { %v1719_v44 = vmul.f32 -1.442695, %v2644_v4 }
 0xf90   :  { %2104 = vpow2.f32 %v1718_v43 }
 0xf91   :  { %2106 = vpow2.f32 %v1719_v44 }
 0xf9a   :  { %v2105_v45 = vpop.eup %2104 }
 0xf9b   :  { %v1540_v46 = vadd.f32 1.0, %v2105_v45  ;;  %v2107_v47 = vpop.eup %2106 }
 0xf9c   :  { %v1563_v49 = vadd.f32 1.0, %v2107_v47 }
 0xf9d   :  { %2108 = vrcp.f32 %v1540_v46 }
 0xf9e   :  { %2110 = vrcp.f32 %v1563_v49 }
 0xfa7   :  { %v2109_v54 = vpop.eup %2108 }
 0xfa8   :  { %v1543_v58 = vmul.f32 %v2109_v54, %v2642_v3  ;;  %v2111_v59 = vpop.eup %2110 }
 0xfc8   :  { %v1429_v5 = vpop.xlane.xlu1 %1428 }
 0xfc9   :  { %vm1430_vm11 = vcmp.eq.f32.partialorder %v1426_v60, %v1429_v5  ;;  %v1566_v5 = vmul.f32 %v2111_v59, %v2644_v4 }
 0xfca   :  { %v1431_v8 = vsel %vm1430_vm11, %v2329_v62, 4 }
 0xfcb   :  { %v1432_v9 = vsel %vm1393_vm7, %v1431_v8, 2147483647 }
 0xfcc   :  { %v1434_v10 = vshra.s32 %v1432_v9, 16  ;;  %v1433_v13 = vand.u32 65535, %v1432_v9 }
 0xfce   :  { %v1436_v11 = vcvt.s32.f32 %v1434_v10  ;;  %v1435_v15 = vcvt.s32.f32 %v1433_v13 }
 0xfd0   :  { %1437 = vmin.xlane.f32.xlu1 %v1436_v11 }
0x105d   :  { %v1438_v14 = vpop.xlane.xlu1 %1437 }
0x105e   :  { %vm1439_vm12 = vcmp.eq.f32.partialorder %v1436_v11, %v1438_v14  ;;  %v1444_v17 = vcvt.f32.s32 %v1438_v14 }
0x105f   :  { %v1440_v16 = vsel %vm1439_vm12, %v1435_v15, inf }
0x1060   :  { %1441 = vmin.xlane.f32.xlu1 %v1440_v16  ;;  %v1445_v22 = vshll.u32 %v1444_v17, 16 }
0x10ed   :  { %v1442_v21 = vpop.xlane.xlu1 %1441 }
0x10ee   :  { %v1443_v24 = vcvt.f32.s32 %v1442_v21 }
0x10f0   :  { %v1446_v25 = vadd.s32 %v1445_v22, %v1443_v24 }
0x10f2   :  { %vm1447_vm13 = vcmp.eq.s32.totalorder %v2329_v62, %v1446_v25  ;;  %v1598_v62 = vld [vmem:[%s2745_s14] sm:$0xff] }
0x10f3   :  { %vm1448_vm14 = vmor %vm1425_vm10, %vm1447_vm13 }
0x10f4   :  { %v1449_v26 = vsel %vm1448_vm14, %v2562_v7, 0.0  ;;  %v1599_v7 = vld [vmem:[%s2745_s14 + $0x8] sm:$0xff] }
0x10f5   :  { %1573 = vperm.xlu0 %2072, %v1449_v26   ;;  %1556 = vperm.xlu1 %2071, %v1449_v26   ;;  %v2027_v28 = vpack.c.bf16 %v1599_v7, %v1598_v62 }
0x10f7   :  { %2028 = vmatpush3.bf16.msra.mxu1 %v2027_v28 }
0x10f8   :  { %2029 = vmatprep.subr.bf16.mxu1 %v2116_v6 }
0x10f9   :  { %1545 = vrot.lane.b32.xlu0 %v2642_v3, %s2132_s17  ;;  %2073 = vset.pattern.permute.xlu1 %v2135_v63 }
0x10fa   :  { %1578 = vperm.xlu1 %2073, %v1449_v26   ;;  %2074 = vset.pattern.permute.xlu0 %v2136_v27 }
0x10fb   :  { %2031 = vmatpush3.bf16.msra.mxu1 %v2030_v31 }
0x10fc   :  { %2032 = vmatprep.subr.bf16.mxu1 %v2116_v6 }
0x10fd   :  { %1551 = vperm.xlu0 %2074, %v1449_v26  }
0x10fe   :  { %1568 = vrot.lane.b32.xlu1 %v2644_v4, %s2132_s17 }
0x10ff   :  { %2034 = vmatpush3.bf16.msra.mxu1 %v2033_v34 }
0x1100   :  { %2035 = vmatprep.subr.bf16.mxu1 %v2116_v6 }
0x1101   :  { %2075 = vset.pattern.permute.xlu0 %v2135_v63 }
0x1103   :  { %2037 = vmatpush3.bf16.msra.mxu1 %v2036_v37 }
0x1104   :  { %2038 = vmatprep.subr.bf16.mxu1 %v2116_v6 }
0x1107   :  { %2040 = vmatpush3.bf16.msra.mxu1 %v2039_v40 }
0x1108   :  { %2041 = vmatprep.subr.bf16.mxu1 %v2116_v6 }
0x110b   :  { %2043 = vmatpush3.bf16.msra.mxu1 %v2042_v42 }
0x110c   :  { %2044 = vmatprep.subr.bf16.mxu1 %v2116_v6 }
0x110f   :  { %2046 = vmatpush3.bf16.msra.mxu1 %v2045_v12 }
0x1110   :  { %2047 = vmatprep.subr.bf16.mxu1 %v2116_v6  ;;  %v1714_v6 = vld [vmem:[%s2746_s10] ss:$0 sm:$0xff] }
0x1111   :  { %v1304_v3 = vmul.f32 %v1714_v6, %v2550_v55 }
0x1113   :  { %2049 = vmatpush3.bf16.msra.mxu1 %v2048_v53  ;;  %v1305_v4 = vsel %vm53_vm0, %v1304_v3, 0.0 }
0x1174   :  { %v1574_v56 = vpop.permute.xlu0 %1573  ;;  %v1557_v57 = vpop.permute.xlu1 %1556 }
0x1178   :  { %v1546_v29 = vpop.permute.xlu0 %1545 }
0x1179   :  { %v1548_v60 = vmul.f32 %v1546_v29, %v1543_v58  ;;  %v1579_v48 = vpop.permute.xlu1 %1578 }
0x117b   :  { %v1559_v2 = vmul.f32 %v1557_v57, %v1548_v60 }
0x117c   :  { %v1552_v13 = vpop.permute.xlu0 %1551 }
0x117d   :  { %1583 = vrot.lane.b32.xlu1 %v1559_v2, %s2132_s17  ;;  %v1569_v8 = vpop.permute.xlu1 %1568  ;;  %v1554_v15 = vmul.f32 %v1552_v13, %v1548_v60 }
0x117e   :  { %v1571_v9 = vmul.f32 %v1569_v8, %v1566_v5 }
0x1180   :  { %v1576_v10 = vmul.f32 %v1574_v56, %v1571_v9  ;;  %v1581_v11 = vmul.f32 %v1579_v48, %v1571_v9 }
0x1182   :  { %1591 = vrot.lane.b32.xlu0 %v1581_v11, %s2125_s25  ;;  %1587 = vrot.lane.b32.xlu1 %v1576_v10, %s2119_s19 }
0x1186   :  { %1685 = vrot.lane.b32.xlu0 %v2485_v23, %s2119_s19 }
0x11a6   :  { %1306 = vadd.xlane.f32.xlu1 %v1305_v4 }
0x11ef   :  { %v1584_v14 = vpop.permute.xlu1 %1583 }
0x11f0   :  { %v1594_v16 = vsel %vm1026_vm5, %v1554_v15, %v1584_v14 }
0x11f4   :  { %v1592_v19 = vpop.permute.xlu0 %1591  ;;  %v1588_v20 = vpop.permute.xlu1 %1587 }
0x11f5   :  { %v1595_v17 = vsel %vm53_vm0, %v1594_v16, %v1588_v20 }
0x11f6   :  { %v1597_v23 = vsel %vm1596_vm15, %v1595_v17, %v1592_v19 }
0x11f7   :  { %1954 = vmatmul.mubr.f32.vlgmr.msra.gmra.mrb[16].mxu1 %v1597_v23 }
0x11f8   :  { %v1686_v7 = vpop.permute.xlu0 %1685 }
0x1233   :  { %v1307_v21 = vpop.xlane.xlu1 %1306 }
0x1234   :  { %v1715_v22 = vmul.f32 -1.442695, %v1307_v21 }
0x1236   :  { %2112 = vpow2.f32 %v1715_v22 }
0x1240   :  { %v2113_v24 = vpop.eup %2112 }
0x1241   :  { %v1311_v55 = vadd.f32 1.0, %v2113_v24 }
0x1243   :  { %2114 = vrcp.f32 %v1311_v55 }
0x124d   :  { %v2115_v25 = vpop.eup %2114 }
0x124e   :  { %v1314_v26 = vmul.f32 %v2115_v25, %v2640_v1 }
0x12ca   :  { %v1680_v63 = vpop.f32.mrb[16].mxu1 }
0x12cb   :  { %v1681_v27 = vadd.f32 %v1680_v63, %v1314_v26  ;;  %v1955_v62 = vpop.f32.mrb[17].mxu1 }
0x12cd   :  { %v1688_v0 = vsel %vm53_vm0, %v1681_v27, %v1686_v7 }
0x12ce   :  { %1689 = vst [vmem:[%s2747_s15] sm:$0xff] %v1688_v0 }

</bundles_post_ra>
